<compile_context>
chip_gen: v7x
topology: tpu7x:2x2x1
jax: 0.10.0
libtpu: 0.0.40
codegen_flags: <defaults>
</compile_context>

<pallas_src>
import functools

import jax
import jax.numpy as jnp
from jax import lax
from jax.experimental import pallas as pl
from jax.experimental.pallas import tpu as pltpu


def _round_up(x, m):
    return ((x + m - 1) // m) * m


def _grid_pull_kernel(inp_ref, coord_ref, out_ref, wt_ref, *, H, W):
    """One grid step = (batch b, output-pixel tile p, channel tile c).

    inp_ref   : (1, TC, Nin)   flattened input image tile (native dtype)
    coord_ref : (1, 2, TNp)    row 0 = coord along H, row 1 = coord along W
    out_ref   : (1, TC, TNp)
    wt_ref    : (Nin, TNp)     f32 scratch: interpolation matrix, cached across
                               channel tiles (depends only on (b, p))
    """
    c_idx = pl.program_id(2)
    nin, tnp = wt_ref.shape

    # Build WT only on the first channel tile (C is the innermost, "arbitrary"
    # grid axis, so for fixed (b, p) it is built once and reused).
    @pl.when(c_idx == 0)
    def _build_wt():
        g = coord_ref[0].astype(jnp.float32)            # (2, TNp)
        gy = g[0:1, :]                                  # coord along H
        gx = g[1:2, :]                                  # coord along W

        h0f = jnp.floor(gy)
        w0f = jnp.floor(gx)
        fh = gy - h0f
        fw = gx - w0f
        h0 = h0f.astype(jnp.int32)
        w0 = w0f.astype(jnp.int32)
        h1 = h0 + 1
        w1 = w0 + 1

        vh0 = (h0 >= 0) & (h0 < H)
        vh1 = (h1 >= 0) & (h1 < H)
        vw0 = (w0 >= 0) & (w0 < W)
        vw1 = (w1 >= 0) & (w1 < W)

        def flat_idx(h, w, valid):
            # bound='zero': out-of-range corner contributes nothing -> index -1
            # (never matches the iota).
            return jnp.where(valid, h * W + w, -1)

        idx00 = flat_idx(h0, w0, vh0 & vw0)
        idx01 = flat_idx(h0, w1, vh0 & vw1)
        idx10 = flat_idx(h1, w0, vh1 & vw0)
        idx11 = flat_idx(h1, w1, vh1 & vw1)

        # extrapolate=False: zero samples whose coordinate is outside the FOV
        # (torch-interpol uses a 5e-2 tolerance). Folded into the 4 corner
        # weights (shapes (1, TNp)) to avoid a full (Nin, TNp) VPU pass.
        tiny = 5e-2
        inb = ((gy > -tiny) & (gy < H - 1 + tiny) &
               (gx > -tiny) & (gx < W - 1 + tiny)).astype(jnp.float32)

        wt00 = (1.0 - fh) * (1.0 - fw) * inb
        wt01 = (1.0 - fh) * fw * inb
        wt10 = fh * (1.0 - fw) * inb
        wt11 = fh * fw * inb

        # Sparse interpolation matrix: input-pixel index on sublanes, output
        # pixel on lanes. q never equals -1, so masked corners vanish.
        q = lax.broadcasted_iota(jnp.int32, (nin, tnp), 0)     # (Nin, TNp)
        wt_ref[...] = (jnp.where(q == idx00, wt00, 0.0) +
                       jnp.where(q == idx01, wt01, 0.0) +
                       jnp.where(q == idx10, wt10, 0.0) +
                       jnp.where(q == idx11, wt11, 0.0))

    lhs = inp_ref[0]                                     # (TC, Nin), native dtype
    rhs = wt_ref[...].astype(lhs.dtype)                  # bf16 MXU path if input bf16
    out = jnp.dot(lhs, rhs, preferred_element_type=jnp.float32)   # (TC, TNp)
    out_ref[0] = out.astype(out_ref.dtype)


def grid_pull(inp, grid):
    """inp: (B, C, H, W) float; grid: (B, 2, Ho, Wo) voxel coords (H then W)."""
    # TODO(synk): integer (label-map) inputs would need per-label soft resample
    # + argmax reconstruction; only floating-point images are handled here.
    assert jnp.issubdtype(inp.dtype, jnp.floating), "label-map inputs not supported"
    B, C, H, W = inp.shape
    Bg, nd, Ho, Wo = grid.shape
    assert Bg == B and nd == 2

    Nin = H * W
    Np = Ho * Wo

    # ---- tile sizes -------------------------------------------------------
    # Output-pixel tile: lane-dense multiple of 128, sized so the f32 WT tile
    # (Nin x TNp) stays well under VMEM even on v7x (64 MiB / TensorCore).
    wt_budget = 12 * 1024 * 1024
    tnp = max(128, (wt_budget // max(Nin * 4, 1)) // 128 * 128)
    tnp = min(tnp, 512, _round_up(Np, 128))
    np_pad = _round_up(Np, tnp)

    # Channel tile: full C when small (block dim may equal the array dim);
    # otherwise multiples of 8 so WT is reused across channel tiles.
    tc = C if C <= 128 else 128
    c_pad = _round_up(C, tc)

    nin_pad = _round_up(Nin, 128)       # lane-dense matmul K dimension

    # ---- pad & flatten ----------------------------------------------------
    inp_flat = inp.reshape(B, C, Nin)
    if c_pad != C or nin_pad != Nin:
        inp_flat = jnp.pad(inp_flat, ((0, 0), (0, c_pad - C), (0, nin_pad - Nin)))
    grid_flat = grid.reshape(B, 2, Np)
    if np_pad != Np:
        # pad with an out-of-FOV coordinate -> padded samples are exactly zero
        grid_flat = jnp.pad(grid_flat, ((0, 0), (0, 0), (0, np_pad - Np)),
                            constant_values=-10.0)

    grid_dims = (B, np_pad // tnp, c_pad // tc)
    kern = functools.partial(_grid_pull_kernel, H=H, W=W)

    # Advisory cost estimate (matmul + ~12 VALU ops/element for the WT build).
    flops = 2 * B * c_pad * nin_pad * np_pad + 12 * B * nin_pad * np_pad
    itemsize = inp.dtype.itemsize
    bytes_accessed = (inp_flat.size * inp_flat.dtype.itemsize
                      + grid_flat.size * grid_flat.dtype.itemsize
                      + B * c_pad * np_pad * itemsize)

    # Rough VMEM footprint: WT scratch + double-buffered in/out tiles.
    vmem_est = (nin_pad * tnp * 4
                + 2 * tc * nin_pad * itemsize
                + 2 * 2 * tnp * grid_flat.dtype.itemsize
                + 2 * tc * tnp * itemsize)
    vmem_limit = int(min(max(2 * vmem_est, 32 << 20), 100 << 20))

    out = pl.pallas_call(
        kern,
        out_shape=jax.ShapeDtypeStruct((B, c_pad, np_pad), inp.dtype),
        grid=grid_dims,
        in_specs=[
            pl.BlockSpec((1, tc, nin_pad), lambda b, p, c: (b, c, 0)),
            pl.BlockSpec((1, 2, tnp), lambda b, p, c: (b, 0, p)),
        ],
        out_specs=pl.BlockSpec((1, tc, tnp), lambda b, p, c: (b, c, p)),
        scratch_shapes=[pltpu.VMEM((nin_pad, tnp), jnp.float32)],
        compiler_params=pltpu.CompilerParams(
            dimension_semantics=("parallel", "parallel", "arbitrary"),
            vmem_limit_bytes=vmem_limit),
        cost_estimate=pl.CostEstimate(
            flops=flops, transcendentals=0, bytes_accessed=bytes_accessed),
    )(inp_flat, grid_flat)

    return out[:, :C, :Np].reshape(B, C, Ho, Wo)


def grid_pull_ref(inp, grid):
    """Pure-JAX reference (same semantics) for correctness checking."""
    B, C, H, W = inp.shape
    gy = grid[:, 0]
    gx = grid[:, 1]
    h0f = jnp.floor(gy)
    w0f = jnp.floor(gx)
    fh = gy - h0f
    fw = gx - w0f
    h0 = h0f.astype(jnp.int32)
    w0 = w0f.astype(jnp.int32)
    h1 = h0 + 1
    w1 = w0 + 1
    bidx = jnp.arange(B)[:, None, None, None]
    cidx = jnp.arange(C)[None, :, None, None]

    def sample(h, w):
        valid = (h >= 0) & (h < H) & (w >= 0) & (w < W)
        hc = jnp.clip(h, 0, H - 1)
        wc = jnp.clip(w, 0, W - 1)
        val = inp[bidx, cidx, hc[:, None], wc[:, None]]
        return val * valid[:, None].astype(inp.dtype)

    out = (sample(h0, w0) * ((1 - fh) * (1 - fw))[:, None]
           + sample(h0, w1) * ((1 - fh) * fw)[:, None]
           + sample(h1, w0) * (fh * (1 - fw))[:, None]
           + sample(h1, w1) * (fh * fw)[:, None])
    tiny = 5e-2
    inb = ((gy > -tiny) & (gy < H - 1 + tiny) &
           (gx > -tiny) & (gx < W - 1 + tiny))
    return out * inb[:, None].astype(inp.dtype)


if __name__ == "__main__":
    key = jax.random.PRNGKey(0)

    # --- case 1: aligned shapes -------------------------------------------
    B, C, H, W = 2, 4, 16, 16
    Ho, Wo = 16, 16
    k1, k2, k3, k4 = jax.random.split(key, 4)
    inp = jax.random.normal(k1, (B, C, H, W), jnp.float32)
    ys = jnp.arange(Ho, dtype=jnp.float32)
    xs = jnp.arange(Wo, dtype=jnp.float32)
    base = jnp.stack(jnp.meshgrid(ys, xs, indexing="ij"), axis=0)   # (2, Ho, Wo)
    disp = jax.random.uniform(k2, (B, 2, Ho, Wo), jnp.float32, -2.5, 2.5)
    grid = base[None] + disp                                        # some coords go OOB

    out = grid_pull(inp, grid)
    jax.block_until_ready(out)
    ref = grid_pull_ref(inp, grid)
    assert out.shape == (B, C, Ho, Wo)
    err = float(jnp.max(jnp.abs(out - ref)))
    assert err < 1e-4, f"max abs err {err}"

    # --- case 2: non-aligned output shape (exercises the padding path) -----
    Ho2, Wo2 = 12, 20
    inp2 = jax.random.normal(k3, (B, 3, H, W), jnp.float32)
    ys2 = jnp.linspace(0.0, H - 1.0, Ho2)
    xs2 = jnp.linspace(0.0, W - 1.0, Wo2)
    base2 = jnp.stack(jnp.meshgrid(ys2, xs2, indexing="ij"), axis=0)
    disp2 = jax.random.uniform(k4, (B, 2, Ho2, Wo2), jnp.float32, -2.5, 2.5)
    grid2 = base2[None] + disp2

    out2 = grid_pull(inp2, grid2)
    jax.block_until_ready(out2)
    ref2 = grid_pull_ref(inp2, grid2)
    assert out2.shape == (B, 3, Ho2, Wo2)
    err2 = float(jnp.max(jnp.abs(out2 - ref2)))
    assert err2 < 1e-4, f"max abs err {err2}"

    print("KERNEL_OK")
</pallas_src>

<mosaic_0001>
module attributes {stable_mosaic.version = 11 : i64} {
  func.func @_grid_pull_kernel(%arg0: i32, %arg1: i32, %arg2: i32, %arg3: memref<1x4x256xf32, #tpu.memory_space<vmem>>, %arg4: memref<1x2x256xf32, #tpu.memory_space<vmem>>, %arg5: memref<1x4x256xf32, #tpu.memory_space<vmem>>, %arg6: memref<256x256xf32, #tpu.memory_space<vmem>>) attributes {dimension_semantics = [#tpu.dimension_semantics<parallel>, #tpu.dimension_semantics<parallel>, #tpu.dimension_semantics<arbitrary>], iteration_bounds = array<i64: 2, 1, 1>, scalar_prefetch = 0 : i64, scratch_operands = 1 : i64, tpu.core_type = #tpu.core_type<tc>, window_params = [{transform_indices = @transform_0, window_bounds = array<i64: 1, 4, 256>}, {transform_indices = @transform_1, window_bounds = array<i64: 1, 2, 256>}, {transform_indices = @transform_2, window_bounds = array<i64: 1, 4, 256>}]} {
    %c0_i32 = arith.constant 0 : i32
    %0 = arith.cmpi eq, %arg2, %c0_i32 : i32
    %1 = arith.extui %0 : i1 to i32
    %c0_i32_0 = arith.constant 0 : i32
    %2 = arith.cmpi ne, %1, %c0_i32_0 : i32
    scf.if %2 {
      %c0_8 = arith.constant 0 : index
      %c0_9 = arith.constant 0 : index
      %c0_10 = arith.constant 0 : index
      %10 = vector.load %arg4[%c0_8, %c0_9, %c0_10] : memref<1x2x256xf32, #tpu.memory_space<vmem>>, vector<1x2x256xf32>
      %11 = vector.shape_cast %10 : vector<1x2x256xf32> to vector<2x256xf32>
      %12 = vector.extract_strided_slice %11 {offsets = [0, 0], sizes = [1, 256], strides = [1, 1]} : vector<2x256xf32> to vector<1x256xf32>
      %13 = vector.extract_strided_slice %11 {offsets = [1, 0], sizes = [1, 256], strides = [1, 1]} : vector<2x256xf32> to vector<1x256xf32>
      %14 = math.floor %12 : vector<1x256xf32>
      %15 = math.floor %13 : vector<1x256xf32>
      %16 = arith.subf %12, %14 : vector<1x256xf32>
      %17 = arith.subf %13, %15 : vector<1x256xf32>
      %18 = arith.fptosi %14 : vector<1x256xf32> to vector<1x256xi32>
      %19 = arith.fptosi %15 : vector<1x256xf32> to vector<1x256xi32>
      %c1_i32 = arith.constant 1 : i32
      %20 = vector.broadcast %c1_i32 : i32 to vector<1x256xi32>
      %21 = arith.addi %18, %20 : vector<1x256xi32>
      %c1_i32_11 = arith.constant 1 : i32
      %22 = vector.broadcast %c1_i32_11 : i32 to vector<1x256xi32>
      %23 = arith.addi %19, %22 : vector<1x256xi32>
      %c0_i32_12 = arith.constant 0 : i32
      %24 = vector.broadcast %c0_i32_12 : i32 to vector<1x256xi32>
      %25 = arith.cmpi sge, %18, %24 : vector<1x256xi32>
      %c16_i32 = arith.constant 16 : i32
      %26 = vector.broadcast %c16_i32 : i32 to vector<1x256xi32>
      %27 = arith.cmpi slt, %18, %26 : vector<1x256xi32>
      %28 = arith.andi %25, %27 : vector<1x256xi1>
      %c0_i32_13 = arith.constant 0 : i32
      %29 = vector.broadcast %c0_i32_13 : i32 to vector<1x256xi32>
      %30 = arith.cmpi sge, %21, %29 : vector<1x256xi32>
      %c16_i32_14 = arith.constant 16 : i32
      %31 = vector.broadcast %c16_i32_14 : i32 to vector<1x256xi32>
      %32 = arith.cmpi slt, %21, %31 : vector<1x256xi32>
      %33 = arith.andi %30, %32 : vector<1x256xi1>
      %c0_i32_15 = arith.constant 0 : i32
      %34 = vector.broadcast %c0_i32_15 : i32 to vector<1x256xi32>
      %35 = arith.cmpi sge, %19, %34 : vector<1x256xi32>
      %c16_i32_16 = arith.constant 16 : i32
      %36 = vector.broadcast %c16_i32_16 : i32 to vector<1x256xi32>
      %37 = arith.cmpi slt, %19, %36 : vector<1x256xi32>
      %38 = arith.andi %35, %37 : vector<1x256xi1>
      %c0_i32_17 = arith.constant 0 : i32
      %39 = vector.broadcast %c0_i32_17 : i32 to vector<1x256xi32>
      %40 = arith.cmpi sge, %23, %39 : vector<1x256xi32>
      %c16_i32_18 = arith.constant 16 : i32
      %41 = vector.broadcast %c16_i32_18 : i32 to vector<1x256xi32>
      %42 = arith.cmpi slt, %23, %41 : vector<1x256xi32>
      %43 = arith.andi %40, %42 : vector<1x256xi1>
      %44 = arith.andi %28, %38 : vector<1x256xi1>
      %c16_i32_19 = arith.constant 16 : i32
      %45 = vector.broadcast %c16_i32_19 : i32 to vector<1x256xi32>
      %46 = arith.muli %18, %45 : vector<1x256xi32>
      %47 = arith.addi %46, %19 : vector<1x256xi32>
      %c-1_i32 = arith.constant -1 : i32
      %48 = vector.broadcast %c-1_i32 : i32 to vector<1x256xi32>
      %49 = arith.select %44, %47, %48 : vector<1x256xi1>, vector<1x256xi32>
      %50 = arith.andi %28, %43 : vector<1x256xi1>
      %c16_i32_20 = arith.constant 16 : i32
      %51 = vector.broadcast %c16_i32_20 : i32 to vector<1x256xi32>
      %52 = arith.muli %18, %51 : vector<1x256xi32>
      %53 = arith.addi %52, %23 : vector<1x256xi32>
      %c-1_i32_21 = arith.constant -1 : i32
      %54 = vector.broadcast %c-1_i32_21 : i32 to vector<1x256xi32>
      %55 = arith.select %50, %53, %54 : vector<1x256xi1>, vector<1x256xi32>
      %56 = arith.andi %33, %38 : vector<1x256xi1>
      %c16_i32_22 = arith.constant 16 : i32
      %57 = vector.broadcast %c16_i32_22 : i32 to vector<1x256xi32>
      %58 = arith.muli %21, %57 : vector<1x256xi32>
      %59 = arith.addi %58, %19 : vector<1x256xi32>
      %c-1_i32_23 = arith.constant -1 : i32
      %60 = vector.broadcast %c-1_i32_23 : i32 to vector<1x256xi32>
      %61 = arith.select %56, %59, %60 : vector<1x256xi1>, vector<1x256xi32>
      %62 = arith.andi %33, %43 : vector<1x256xi1>
      %c16_i32_24 = arith.constant 16 : i32
      %63 = vector.broadcast %c16_i32_24 : i32 to vector<1x256xi32>
      %64 = arith.muli %21, %63 : vector<1x256xi32>
      %65 = arith.addi %64, %23 : vector<1x256xi32>
      %c-1_i32_25 = arith.constant -1 : i32
      %66 = vector.broadcast %c-1_i32_25 : i32 to vector<1x256xi32>
      %67 = arith.select %62, %65, %66 : vector<1x256xi1>, vector<1x256xi32>
      %cst_26 = arith.constant -5.000000e-02 : f32
      %68 = vector.broadcast %cst_26 : f32 to vector<1x256xf32>
      %69 = arith.cmpf ogt, %12, %68 : vector<1x256xf32>
      %cst_27 = arith.constant 1.505000e+01 : f32
      %70 = vector.broadcast %cst_27 : f32 to vector<1x256xf32>
      %71 = arith.cmpf olt, %12, %70 : vector<1x256xf32>
      %72 = arith.andi %69, %71 : vector<1x256xi1>
      %cst_28 = arith.constant -5.000000e-02 : f32
      %73 = vector.broadcast %cst_28 : f32 to vector<1x256xf32>
      %74 = arith.cmpf ogt, %13, %73 : vector<1x256xf32>
      %75 = arith.andi %72, %74 : vector<1x256xi1>
      %cst_29 = arith.constant 1.505000e+01 : f32
      %76 = vector.broadcast %cst_29 : f32 to vector<1x256xf32>
      %77 = arith.cmpf olt, %13, %76 : vector<1x256xf32>
      %78 = arith.andi %75, %77 : vector<1x256xi1>
      %79 = arith.extui %78 : vector<1x256xi1> to vector<1x256xi32>
      %80 = arith.sitofp %79 : vector<1x256xi32> to vector<1x256xf32>
      %cst_30 = arith.constant 1.000000e+00 : f32
      %81 = vector.broadcast %cst_30 : f32 to vector<1x256xf32>
      %82 = arith.subf %81, %16 : vector<1x256xf32>
      %cst_31 = arith.constant 1.000000e+00 : f32
      %83 = vector.broadcast %cst_31 : f32 to vector<1x256xf32>
      %84 = arith.subf %83, %17 : vector<1x256xf32>
      %85 = arith.mulf %82, %84 : vector<1x256xf32>
      %86 = arith.mulf %85, %80 : vector<1x256xf32>
      %cst_32 = arith.constant 1.000000e+00 : f32
      %87 = vector.broadcast %cst_32 : f32 to vector<1x256xf32>
      %88 = arith.subf %87, %16 : vector<1x256xf32>
      %89 = arith.mulf %88, %17 : vector<1x256xf32>
      %90 = arith.mulf %89, %80 : vector<1x256xf32>
      %cst_33 = arith.constant 1.000000e+00 : f32
      %91 = vector.broadcast %cst_33 : f32 to vector<1x256xf32>
      %92 = arith.subf %91, %17 : vector<1x256xf32>
      %93 = arith.mulf %16, %92 : vector<1x256xf32>
      %94 = arith.mulf %93, %80 : vector<1x256xf32>
      %95 = arith.mulf %16, %17 : vector<1x256xf32>
      %96 = arith.mulf %95, %80 : vector<1x256xf32>
      %97 = tpu.iota {dimensions = array<i32: 0>} : vector<256x256xi32>
      %98 = vector.broadcast %49 : vector<1x256xi32> to vector<256x256xi32>
      %99 = arith.cmpi eq, %97, %98 : vector<256x256xi32>
      %cst_34 = arith.constant 0.000000e+00 : f32
      %100 = vector.shape_cast %86 : vector<1x256xf32> to vector<1x256xf32>
      %101 = vector.broadcast %100 : vector<1x256xf32> to vector<256x256xf32>
      %102 = vector.broadcast %cst_34 : f32 to vector<256x256xf32>
      %103 = arith.select %99, %101, %102 : vector<256x256xi1>, vector<256x256xf32>
      %104 = vector.broadcast %55 : vector<1x256xi32> to vector<256x256xi32>
      %105 = arith.cmpi eq, %97, %104 : vector<256x256xi32>
      %cst_35 = arith.constant 0.000000e+00 : f32
      %106 = vector.shape_cast %90 : vector<1x256xf32> to vector<1x256xf32>
      %107 = vector.broadcast %106 : vector<1x256xf32> to vector<256x256xf32>
      %108 = vector.broadcast %cst_35 : f32 to vector<256x256xf32>
      %109 = arith.select %105, %107, %108 : vector<256x256xi1>, vector<256x256xf32>
      %110 = arith.addf %103, %109 : vector<256x256xf32>
      %111 = vector.broadcast %61 : vector<1x256xi32> to vector<256x256xi32>
      %112 = arith.cmpi eq, %97, %111 : vector<256x256xi32>
      %cst_36 = arith.constant 0.000000e+00 : f32
      %113 = vector.shape_cast %94 : vector<1x256xf32> to vector<1x256xf32>
      %114 = vector.broadcast %113 : vector<1x256xf32> to vector<256x256xf32>
      %115 = vector.broadcast %cst_36 : f32 to vector<256x256xf32>
      %116 = arith.select %112, %114, %115 : vector<256x256xi1>, vector<256x256xf32>
      %117 = arith.addf %110, %116 : vector<256x256xf32>
      %118 = vector.broadcast %67 : vector<1x256xi32> to vector<256x256xi32>
      %119 = arith.cmpi eq, %97, %118 : vector<256x256xi32>
      %cst_37 = arith.constant 0.000000e+00 : f32
      %120 = vector.shape_cast %96 : vector<1x256xf32> to vector<1x256xf32>
      %121 = vector.broadcast %120 : vector<1x256xf32> to vector<256x256xf32>
      %122 = vector.broadcast %cst_37 : f32 to vector<256x256xf32>
      %123 = arith.select %119, %121, %122 : vector<256x256xi1>, vector<256x256xf32>
      %124 = arith.addf %117, %123 : vector<256x256xf32>
      %c0_38 = arith.constant 0 : index
      %c0_39 = arith.constant 0 : index
      %125 = vector.load %arg6[%c0_38, %c0_39] : memref<256x256xf32, #tpu.memory_space<vmem>>, vector<256x256xf32>
      tpu.vector_store %arg6[%c0_38, %c0_39], %124 {strides = array<i32>} : memref<256x256xf32, #tpu.memory_space<vmem>>, vector<256x256xf32>,
    } else {
    }
    %c0 = arith.constant 0 : index
    %c0_1 = arith.constant 0 : index
    %c0_2 = arith.constant 0 : index
    %3 = vector.load %arg3[%c0, %c0_1, %c0_2] : memref<1x4x256xf32, #tpu.memory_space<vmem>>, vector<1x4x256xf32>
    %4 = vector.shape_cast %3 : vector<1x4x256xf32> to vector<4x256xf32>
    %c0_3 = arith.constant 0 : index
    %c0_4 = arith.constant 0 : index
    %5 = vector.load %arg6[%c0_3, %c0_4] : memref<256x256xf32, #tpu.memory_space<vmem>>, vector<256x256xf32>
    %cst = arith.constant dense<0.000000e+00> : vector<4x256xf32>
    %6 = tpu.matmul %4, %5, %cst {dimension_numbers = #tpu.dot_dimension_numbers<[1], [0], [0], [1], [0, 0, 1, 1], [], []>} : vector<4x256xf32>, vector<256x256xf32>, vector<4x256xf32> -> vector<4x256xf32>
    %c0_5 = arith.constant 0 : index
    %c0_6 = arith.constant 0 : index
    %c0_7 = arith.constant 0 : index
    %7 = vector.load %arg5[%c0_5, %c0_6, %c0_7] : memref<1x4x256xf32, #tpu.memory_space<vmem>>, vector<1x4x256xf32>
    %8 = vector.shape_cast %7 : vector<1x4x256xf32> to vector<4x256xf32>
    %9 = vector.shape_cast %6 : vector<4x256xf32> to vector<1x4x256xf32>
    tpu.vector_store %arg5[%c0_5, %c0_6, %c0_7], %9 {strides = array<i32>} : memref<1x4x256xf32, #tpu.memory_space<vmem>>, vector<1x4x256xf32>,
    return
  }
  func.func @transform_0(%arg0: i32, %arg1: i32, %arg2: i32) -> (i32, i32, i32) {
    %c0_i32 = arith.constant 0 : i32
    %c0_i32_0 = arith.constant 0 : i32
    return %arg0, %arg2, %c0_i32 : i32, i32, i32
  }
  func.func @transform_1(%arg0: i32, %arg1: i32, %arg2: i32) -> (i32, i32, i32) {
    %c0_i32 = arith.constant 0 : i32
    %c0_i32_0 = arith.constant 0 : i32
    return %arg0, %c0_i32, %arg1 : i32, i32, i32
  }
  func.func @transform_2(%arg0: i32, %arg1: i32, %arg2: i32) -> (i32, i32, i32) {
    %c0_i32 = arith.constant 0 : i32
    return %arg0, %arg2, %arg1 : i32, i32, i32
  }
}

</mosaic_0001>

<bundles_post_ra>
// kernel: tpu_custom_call.1
= control target key start
LH: loop header
LB: loop body
LE: loop exit
PB: predicated region body
PF: predicated region fallthrough
CT: control target
= control target key end

     0   :  { %7 = vsyncpa [#allocation4], 0  ;;  %s2923_s0 = inlined_call_operand.hbm [shape: f32[2,4,256], index: 0, kind: input, shape index: {}]   ;;  %s2924_s1 = inlined_call_operand.hbm [shape: f32[2,2,256], index: 1, kind: input, shape index: {}]   ;;  %s2925_s2 = inlined_call_operand.hbm [shape: f32[2,4,256], index: 2, kind: output, shape index: {}]  }
   0x1   :  { %9 = vsyncpa [#allocation4 + $0x1], 0 }
   0x2   :  { %10 = vsyncpa [#allocation7], 0 }
   0x3   :  { %12 = vsyncpa [#allocation7 + $0x1], 0 }
   0x4   :  { %13 = vsyncpa [#allocation5], 0 }
   0x5   :  { %15 = vsyncpa [#allocation5 + $0x1], 0  ;;  %s1854_s9 = smov 0   ;;  %s1856_s10 = smov 0  }
   0x6   :  { %s1858_s11 = smov 0   ;;  %s1860_s12 = smov 0  }
   0x7   :  { %s1862_s13 = smov 0   ;;  %s1864_s14 = smov 0  }
   0x8 LB: > { %s1523_s15 = sadd.s32 4294967295, %s1832_s14   ;;  %s1524_s16 = sadd.s32 4294967294, %s1832_s14   ;;  %s1832_s14 = sphi %s1864_s14, %s21_s14   ;;  %s1828_s13 = sphi %s1862_s13, %s2953_s13   ;;  %s1824_s12 = sphi %s1860_s12, %s2952_s12   ;;  %s1820_s11 = sphi %s1858_s11, %s2951_s11   ;;  %s1816_s10 = sphi %s1856_s10, %s2950_s10   ;;  %s1812_s9 = sphi %s1854_s9, %s2949_s9  }
   0x9   : > { %s40_s17 = sadd.s32 1, %s1828_s13  ;;  %s49_s18 = sadd.s32 1, %s1820_s11 }
   0xa   : > { %p42_p0 = scmp.ge.s32.totalorder %s40_s17, 2  ;;  %p56_p1 = scmp.ne.s32.totalorder %s1820_s11, %s1816_s10 }
   0xb   : > { %p57_p2 = scmp.eq.s32.totalorder %s1832_s14, 0  ;;  %p62_p3 = scmp.ne.s32.totalorder %s1816_s10, %s1812_s9 }
   0xc   : > { %s2955_s17 = smov (%p42_p0, %s40_s17), 0  ;;  %p63_p5 = scmp.eq.s32.totalorder %s1523_s15, 0 }
   0xd   : > { %p1895_p4 = por %p57_p2, %p56_p1  ;;  %s44_s20 = ssub.s32 %s1828_s13, %s2955_s17 }
   0xe   : > { %p118_p6 = scmp.eq.s32.totalorder %s1523_s15, 1  ;;  %p47_p7 = scmp.eq.s32.totalorder %s44_s20, 0 }
   0xf   : > { %p1901_p8 = por %p63_p5, %p62_p3  ;;  %p124_p10 = scmp.eq.s32.totalorder %s1524_s16, 1 }
  0x10   : > { %p1905_p9 = por %p118_p6, %p56_p1  ;;  %p1633_p13 = scmp.lt.s32.totalorder %s1832_s14, 2 }
  0x11   : > { %s2929_s21 = scalar_select %p1901_p8, 1, 0 }
  0x12   : > { %s2930_s22 = scalar_select %p1905_p9, 1, 0 }
  0x13   : > { %s1910_s23 = scalar_select %p47_p7, %s1820_s11, %s49_s18  }
  0x14   : > { %p1912_p11 = por %p124_p10, %p62_p3  ;;  %s1919_s25 = sand.u32 1, %s1820_s11  }
  0x15   : > { %s1527_s26 = sshll.u32 %s1919_s25, 3  ;;  %s1547_s27 = sshll.u32 %s1828_s13, 7 }
  0x16   : > { %s2931_s24 = scalar_select %p1912_p11, 1, 0 }
  0x17   : > { %s1926_s30 = scalar_lea.hbm %s2923_s0, %s1547_s27  ;;  %s148_s3 = scalar_lea.vmem [#allocation3], %s1527_s26 }
  0x18   : > { %s158_s4 = sshll.u32 %s148_s3, 4  ;;  %p1932_p0 = pnand %p1633_p13, %p1895_p4  ;;  %s1928_s4 = int_to_ptr.vmem [resolvable:$true] %s158_s4 }
  0x19   : > { %s145_s6 = scalar_lea.sflag [#allocation4], %s1919_s25  ;;  %s1686_s7 = scalar_lea.hbm %s1926_s30, 128 }
  0x1a   : > { %p1687_p3 = scmp.ne.s32.totalorder %s1926_s30, %s1686_s7  ;;  %p1688_p5 = pneg %p1932_p0 }
  0x1b   : > { %s1691_s16 = scalar_lea.hbm %s2923_s0, 256  ;;  %p1692_p4 = scmp.lt.u32.totalorder %s1926_s30, %s2923_s0 }
  0x1c   : > { %p1689_p6 = pnand %p1688_p5, %p1687_p3  ;;  %p1693_p10 = scmp.lt.u32.totalorder %s1691_s16, %s1686_s7 }
  0x1d   : > { %p1695_p12 = scmp.lt.u32.totalorder %s1686_s7, %s1926_s30 }
  0x1e   : > { %p1690_p7 = pneg %p1689_p6  ;;  %p1694_p13 = por %p1693_p10, %p1692_p4 }
  0x20   : > { %p1696_p1 = por %p1695_p12, %p1694_p13 }
  0x22   : > { %p1697_p2 = pnand %p1696_p1, %p1690_p7 }
  0x24   : > { %1700 = shalt.err (!%p1697_p2)
}
  0x25   : > { %s1701_s20 = scalar_lea.vmem %s1928_s4, 128  ;;  %s1834_s26 = smov [#allocation3]  }
  0x26   : > { %p1702_p3 = scmp.ne.s32.totalorder %s1928_s4, %s1701_s20  ;;  %s1706_s27 = sshll.u32 %s1834_s26, 4  ;;  %s1707_s27 = int_to_ptr.vmem [resolvable:$false] %s1706_s27 }
  0x27   : > { %s1708_s28 = scalar_lea.vmem %s1707_s27, 256  ;;  %p1709_p9 = scmp.lt.s32.totalorder %s1928_s4, %s1707_s27 }
  0x28   : > { %p1704_p6 = pnand %p1702_p3, %p1688_p5  ;;  %p1710_p4 = scmp.lt.s32.totalorder %s1708_s28, %s1701_s20 }
  0x2a   : > { %p1705_p11 = pneg %p1704_p6  ;;  %p1711_p10 = por %p1710_p4, %p1709_p9 }
  0x2c   : > { %p1712_p12 = pnand %p1711_p10, %p1705_p11 }
  0x2e   : > { %1715 = shalt.err (!%p1712_p12)
}
  0x2f   : > { %1625 = dma.hbm_to_vmem [thread:$0]  (!%p1932_p0), %s1926_s30, 128, %s1928_s4, %s145_s6  }
  0x30   : > { %p2933_p1 = scmp.lt.s32.totalorder %s1832_s14, 3  ;;  %p2934_p2 = scmp.ge.s32.totalorder %s1832_s14, 1 }
  0x31   : > { %s1530_s3 = sshll.u32 %s1919_s25, 2  ;;  %s1548_s7 = sshll.u32 %s1828_s13, 6 }
  0x32   : > { %p1968_p7 = pnand %p2934_p2, %p2933_p1  ;;  %s1977_s16 = scalar_lea.hbm %s2924_s1, %s1548_s7 }
  0x33   : > { %s169_s18 = scalar_lea.vmem [#allocation6], %s1530_s3  ;;  %s166_s30 = scalar_lea.sflag [#allocation7], %s1919_s25 }
  0x34   : > { %s2935_s29 = scalar_select %p1968_p7, 1, 0 }
  0x35   : > { %s179_s19 = sshll.u32 %s169_s18, 4  ;;  %s1716_s4 = scalar_lea.hbm %s1977_s16, 64  ;;  %s180_s19 = int_to_ptr.vmem [resolvable:$true] %s179_s19 }
  0x36   : > { %p1717_p9 = scmp.ne.s32.totalorder %s1977_s16, %s1716_s4  ;;  %s1721_s26 = scalar_lea.hbm %s2924_s1, 128 }
  0x37   : > { %p1722_p3 = scmp.lt.u32.totalorder %s1977_s16, %s2924_s1  ;;  %p1723_p6 = scmp.lt.u32.totalorder %s1721_s26, %s1716_s4 }
  0x38   : > { %p1719_p11 = pnand %p1717_p9, %p1688_p5  ;;  %p1725_p10 = scmp.lt.u32.totalorder %s1716_s4, %s1977_s16 }
  0x39   : > { %p1724_p4 = por %p1723_p6, %p1722_p3 }
  0x3a   : > { %p1720_p13 = pneg %p1719_p11 }
  0x3b   : > { %p1726_p12 = por %p1725_p10, %p1724_p4 }
  0x3d   : > { %p1727_p1 = pnand %p1726_p12, %p1720_p13 }
  0x3f   : > { %1730 = shalt.err (!%p1727_p1)
}
  0x40   : > { %s1731_s25 = scalar_lea.vmem %s180_s19, 64  ;;  %s1835_s3 = smov [#allocation6]  }
  0x41   : > { %p1732_p2 = scmp.ne.s32.totalorder %s180_s19, %s1731_s25  ;;  %s1736_s7 = sshll.u32 %s1835_s3, 4  ;;  %s1737_s7 = int_to_ptr.vmem [resolvable:$false] %s1736_s7 }
  0x42   : > { %s1738_s8 = scalar_lea.vmem %s1737_s7, 128  ;;  %p1739_p8 = scmp.lt.s32.totalorder %s180_s19, %s1737_s7 }
  0x43   : > { %p1734_p9 = pnand %p1732_p2, %p1688_p5  ;;  %p1740_p7 = scmp.lt.s32.totalorder %s1738_s8, %s1731_s25 }
  0x45   : > { %p1735_p11 = pneg %p1734_p9  ;;  %p1741_p3 = por %p1740_p7, %p1739_p8 }
  0x47   : > { %p1742_p6 = pnand %p1741_p3, %p1735_p11 }
  0x49   : > { %1745 = shalt.err (!%p1742_p6)
}
  0x4a   : > { %1628 = dma.hbm_to_vmem [thread:$0]  (!%p1932_p0), %s1977_s16, 64, %s180_s19, %s166_s30  }
  0x4b   : > { %p2936_p13 = scmp.ne.s32.totalorder %s2935_s29, 0 }
  0x4c   : > { %s2002_s15 = sand.u32 (!%p2936_p13), 1, %s1816_s10   ;;  %p2937_p8 = scmp.ne.s32.totalorder (!%p2936_p13), %s2929_s21, 0 }
  0x4d   : > { %188 = sbr.rel (%p2936_p13) target bundleno = 539 (0x21b), region = 28  ;;  %s1534_s18 = sshll.u32 (!%p2936_p13), %s2002_s15, 3 }
  0x4e   : > { %s191_s4 = scalar_lea.sflag (!%p2936_p13), [#allocation4], %s2002_s15  ;;  %s2008_s6 = scalar_lea.vmem (!%p2936_p13), [#allocation3], %s1534_s18 }
  0x54   : > { %1799 = dma.done.wait (%p2937_p8), %s191_s4, 128  }
  0x55   : > { %1801 = vsyncadd (%p2937_p8), %s191_s4, 4294967168  ;;  %s1535_s5 = sshll.u32 %s2002_s15, 2  ;;  %s200_s29 = scalar_lea.sflag [#allocation7], %s2002_s15 }
  0x56   : > { %s203_s16 = scalar_lea.vmem [#allocation6], %s1535_s5 }
  0x57   : > { %1803 = dma.done.wait (%p2937_p8), %s200_s29, 64  }
  0x58   : > { %1805 = vsyncadd (%p2937_p8), %s200_s29, 4294967232  ;;  %v304_v0 = vlaneseq  ;;  %v235_v9 = vld [vmem:[%s203_s16] sm:$0xf]  ;;  %v1836_v16 = vmov 0   ;;  %v1837_v40 = vmov 0.0   ;;  %s1549_s21 = sshll.u32 %s1824_s12, 7 }
  0x59   : > { %v236_v14 = vfloor.f32 %v235_v9  ;;  %vm272_vm0 = vcmp.gt.f32.partialorder %v235_v9, -0.05  ;;  %vm273_vm1 = vcmp.lt.f32.partialorder %v235_v9, 15.05  ;;  %s228_s19 = scalar_lea.vmem [#allocation8], %s1534_s18  ;;  %s2874_s27 = scalar_lea.hbm %s2925_s2, %s1549_s21 }
  0x5a   : > { %v2020_v1 = vshrl.u32 %v304_v0, 7  ;;  %v275_v17 = vsel %vm272_vm0, 1, %v1836_v16  ;;  %v280_v18 = vsel %vm273_vm1, 1, %v1836_v16  ;;  %vm2064_vm2 = vmand %vm272_vm0, %vm273_vm1  ;;  %s1408_s30 = sshll.u32 %s228_s19, 4  ;;  %s1390_s28 = scalar_lea.sflag [#allocation5], %s2002_s15  ;;  %s2876_s30 = int_to_ptr.vmem [resolvable:$true] %s1408_s30 }
  0x5b   : > { %v237_v21 = vsub.f32 %v235_v9, %v236_v14  ;;  %v1614_v22 = vtrunc.f32 %v236_v14  ;;  %v1539_v24 = vrot.slane %v275_v17, 9  ;;  %v1540_v25 = vrot.slane %v280_v18, 9  ;;  %s1746_s25 = scalar_lea.vmem %s2876_s30, 128  ;;  %p2946_p5 = scmp.ne.s32.totalorder %s2930_s22, 0 }
  0x5c   : > { %v2023_v2 = vsub.s32 0, %v2020_v1  ;;  %v2026_v3 = vsub.s32 2, %v2020_v1  ;;  %v2029_v4 = vadd.s32 8, %v2020_v1  ;;  %v2032_v5 = vadd.s32 16, %v2020_v1  ;;  %p1747_p0 = scmp.ne.s32.totalorder %s2876_s30, %s1746_s25  ;;  %s1838_s12 = smov [#allocation8]  }
  0x5d   : > { %v2035_v6 = vadd.s32 24, %v2020_v1  ;;  %v2038_v7 = vadd.s32 32, %v2020_v1  ;;  %v2041_v8 = vadd.s32 40, %v2020_v1  ;;  %v2044_v10 = vadd.s32 48, %v2020_v1  ;;  %s1750_s3 = sshll.u32 %s1838_s12, 4  ;;  %s1751_s3 = int_to_ptr.vmem [resolvable:$false] %s1750_s3 }
  0x5e   : > { %v2047_v11 = vadd.s32 56, %v2020_v1  ;;  %v2050_v12 = vadd.s32 64, %v2020_v1  ;;  %v2053_v13 = vadd.s32 72, %v2020_v1  ;;  %v2056_v15 = vadd.s32 80, %v2020_v1  ;;  %p1748_p7 = pnand %p1747_p0, %p2946_p5  ;;  %s1752_s7 = scalar_lea.vmem %s1751_s3, 256 }
  0x5f   : > { %v2059_v19 = vadd.s32 88, %v2020_v1  ;;  %v2062_v20 = vadd.s32 96, %v2020_v1  ;;  %v2069_v26 = vadd.s32 104, %v2020_v1  ;;  %v2072_v27 = vadd.s32 112, %v2020_v1  ;;  %p1753_p10 = scmp.lt.s32.totalorder %s2876_s30, %s1751_s3  ;;  %p1754_p12 = scmp.lt.s32.totalorder %s1752_s7, %s1746_s25 }
  0x60   : > { %v2075_v28 = vadd.s32 120, %v2020_v1  ;;  %v2078_v29 = vadd.s32 128, %v2020_v1  ;;  %v1615_v30 = vcvt.f32.s32 %v1614_v22  ;;  %vm278_vm3 = vcmp.ne.s32.totalorder %v1539_v24, 0  ;;  %p1749_p4 = pneg %p1748_p7 }
  0x61   : > { %vm283_vm4 = vcmp.ne.s32.totalorder %v1540_v25, 0  ;;  %v287_v31 = vsub.f32 1.0, %v237_v21  ;;  %vm279_vm5 = vmand %vm2064_vm2, %vm278_vm3  ;;  %v295_v32 = vrot.slane %v237_v21, 7  ;;  %v2083_v33 = vadd.s32 136, %v2020_v1  ;;  %p1755_p1 = por %p1754_p12, %p1753_p10 }
  0x62   : > { %v2086_v34 = vadd.s32 144, %v2020_v1  ;;  %v2089_v35 = vadd.s32 152, %v2020_v1  ;;  %v239_v36 = vadd.s32 1, %v1615_v30  ;;  %vm240_vm6 = vcmp.ge.s32.totalorder %v1615_v30, 0  ;;  %vm284_vm8 = vmand %vm279_vm5, %vm283_vm4 }
  0x63   : > { %vm241_vm7 = vcmp.lt.s32.totalorder %v1615_v30, 16  ;;  %v251_v37 = vmul.u32 16, %v1615_v30  ;;  %v252_v39 = vrot.slane %v1615_v30, 7  ;;  %v1541_v41 = vsel %vm284_vm8, 1.0, %v1837_v40  ;;  %p1756_p2 = pnand %p1755_p1, %p1749_p4 }
  0x64   : > { %vm2091_vm9 = vmand %vm240_vm6, %vm241_vm7  ;;  %v289_v42 = vrot.slane %v287_v31, 7  ;;  %v296_v43 = vrot.slane %v295_v32, 2  ;;  %vm243_vm10 = vcmp.ge.s32.totalorder %v239_v36, 0  ;;  %vm244_vm11 = vcmp.lt.s32.totalorder %v239_v36, 16 }
  0x65   : > { %v246_v44 = vsel %vm2091_vm9, 1, %v1836_v16  ;;  %v261_v45 = vrot.slane %v239_v36, 7  ;;  %vm2097_vm12 = vmand %vm243_vm10, %vm244_vm11  ;;  %v253_v48 = vrot.slane %v252_v39, 2  ;;  %v266_v49 = vmul.u32 16, %v239_v36 }
  0x66   : > { %v1537_v47 = vrot.slane %v246_v44, 9  ;;  %v290_v50 = vrot.slane %v289_v42, 2  ;;  %v256_v51 = vsel %vm2097_vm12, 1, %v1836_v16  ;;  %v298_v53 = vmul.f32 %v296_v43, %v287_v31 }
  0x67   : > { %v262_v52 = vrot.slane %v261_v45, 2  ;;  %v302_v54 = vmul.f32 %v296_v43, %v237_v21  ;;  %v254_v56 = vadd.s32 %v253_v48, %v251_v37  ;;  %v1538_v57 = vrot.slane %v256_v51, 9 }
  0x68   : > { %vm2103_vm13 = vcmp.ne.s32.totalorder %v1537_v47, 0  ;;  %v267_v58 = vadd.s32 %v266_v49, %v253_v48  ;;  %v292_v61 = vmul.f32 %v290_v50, %v287_v31  ;;  %v299_v62 = vmul.f32 %v1541_v41, %v298_v53 }
  0x69   : > { %vm250_vm14 = vmand %vm2091_vm9, %vm2103_vm13  ;;  %v263_v59 = vadd.s32 %v262_v52, %v251_v37  ;;  %v270_v60 = vadd.s32 %v266_v49, %v262_v52  ;;  %vm259_vm15 = vcmp.ne.s32.totalorder %v1538_v57, 0  ;;  %v300_v0 = vmul.f32 %v290_v50, %v237_v21 }
  0x6a   : > { %v255_v63 = vsel %vm250_vm14, %v254_v56, 4294967295  ;;  %vm265_vm0 = vmand %vm2097_vm12, %vm2103_vm13  ;;  %v303_v9 = vmul.f32 %v1541_v41, %v302_v54  ;;  %v293_v16 = vmul.f32 %v1541_v41, %v292_v61  ;;  %v584_v24 = vrot.slane %v299_v62, %v2023_v2 }
  0x6b   : > { %vm260_vm1 = vmand %vm2091_vm9, %vm259_vm15  ;;  %v268_v14 = vsel %vm265_vm0, %v267_v58, 4294967295  ;;  %v340_v17 = vrot.slane %v255_v63, %v2023_v2  ;;  %v344_v18 = vrot.slane %v255_v63, %v2026_v3  ;;  %v301_v23 = vmul.f32 %v1541_v41, %v300_v0 }
  0x6c   : > { %v264_v22 = vsel %vm260_vm1, %v263_v59, 4294967295  ;;  %vm269_vm2 = vmand %vm2097_vm12, %vm259_vm15  ;;  %v588_v25 = vrot.slane %v299_v62, %v2026_v3  ;;  %v421_v32 = vrot.slane %v293_v16, %v2023_v2  ;;  %v425_v36 = vrot.slane %v293_v16, %v2026_v3 }
  0x6d   : > { %v271_v21 = vsel %vm269_vm2, %v270_v60, 4294967295  ;;  %v2124_v30 = vrot.slane %v340_v17, %v2023_v2  ;;  %v2127_v31 = vrot.slane %v344_v18, %v2023_v2  ;;  %v503_v37 = vrot.slane %v264_v22, %v2023_v2 }
  0x6e   : > { %v507_v38 = vrot.slane %v264_v22, %v2026_v3  ;;  %v2134_v39 = vrot.slane %v584_v24, %v2023_v2  ;;  %v2137_v40 = vrot.slane %v421_v32, %v2023_v2  ;;  %v2140_v41 = vrot.slane %v588_v25, %v2023_v2 }
  0x6f   : > { %v730_v42 = vrot.slane %v268_v14, %v2023_v2  ;;  %v734_v43 = vrot.slane %v268_v14, %v2026_v3  ;;  %v2145_v44 = vrot.slane %v425_v36, %v2023_v2  ;;  %v2148_v45 = vrot.slane %v503_v37, %v2023_v2 }
  0x70   : > { %v2151_v46 = vrot.slane %v507_v38, %v2023_v2  ;;  %v811_v47 = vrot.slane %v301_v23, %v2023_v2  ;;  %v815_v50 = vrot.slane %v301_v23, %v2026_v3  ;;  %v957_v51 = vrot.slane %v271_v21, %v2023_v2 }
  0x71   : > { %v2155_v48 = vrot.slane %v730_v42, %v2023_v2  ;;  %v2158_v49 = vrot.slane %v734_v43, %v2023_v2  ;;  %v961_v53 = vrot.slane %v271_v21, %v2026_v3  ;;  %v1038_v54 = vrot.slane %v303_v9, %v2023_v2 }
  0x72   : > { %v2163_v52 = vrot.slane %v811_v47, %v2023_v2  ;;  %v1042_v55 = vrot.slane %v303_v9, %v2026_v3  ;;  %v2169_v56 = vrot.slane %v815_v50, %v2023_v2  ;;  %v2172_v57 = vrot.slane %v957_v51, %v2023_v2 }
  0x73   : > { %vm354_vm3 = vcmp.eq.s32.totalorder %v2020_v1, %v2127_v31  ;;  %vm356_vm4 = vcmp.eq.s32.totalorder %v2029_v4, %v2127_v31  ;;  %v2179_v58 = vrot.slane %v961_v53, %v2023_v2  ;;  %v2182_v59 = vrot.slane %v1038_v54, %v2023_v2 }
  0x74   : > { %v2185_v3 = vrot.slane %v1042_v55, %v2023_v2  ;;  %v437_v60 = vsel %vm354_vm3, %v2145_v44, 0.0  ;;  %v439_v61 = vsel %vm356_vm4, %v2145_v44, 0.0  ;;  %vm517_vm5 = vcmp.eq.s32.totalorder %v2020_v1, %v2151_v46 }
  0x75   : > { %vm519_vm6 = vcmp.eq.s32.totalorder %v2029_v4, %v2151_v46  ;;  %vm744_vm7 = vcmp.eq.s32.totalorder %v2020_v1, %v2158_v49  ;;  %v600_v62 = vsel %vm517_vm5, %v2140_v41, 0.0  ;;  %vm746_vm8 = vcmp.eq.s32.totalorder %v2029_v4, %v2158_v49 }
  0x76   : > { %v602_v63 = vsel %vm519_vm6, %v2140_v41, 0.0  ;;  %v827_v2 = vsel %vm744_vm7, %v2169_v56, 0.0  ;;  %v664_v0 = vadd.f32 %v600_v62, %v437_v60  ;;  %v829_v14 = vsel %vm746_vm8, %v2169_v56, 0.0 }
  0x77   : > { %v666_v9 = vadd.f32 %v602_v63, %v439_v61  ;;  %vm971_vm9 = vcmp.eq.s32.totalorder %v2020_v1, %v2179_v58  ;;  %vm973_vm10 = vcmp.eq.s32.totalorder %v2029_v4, %v2179_v58  ;;  %vm353_vm11 = vcmp.eq.s32.totalorder %v2020_v1, %v2124_v30 }
  0x78   : > { %v1054_v16 = vsel %vm971_vm9, %v2185_v3, 0.0  ;;  %vm355_vm12 = vcmp.eq.s32.totalorder %v2029_v4, %v2124_v30  ;;  %v891_v17 = vadd.f32 %v827_v2, %v664_v0  ;;  %v1056_v22 = vsel %vm973_vm10, %v2185_v3, 0.0 }
  0x79   : > { %v893_v18 = vadd.f32 %v829_v14, %v666_v9  ;;  %v436_v23 = vsel %vm353_vm11, %v2137_v40, 0.0  ;;  %v438_v24 = vsel %vm355_vm12, %v2137_v40, 0.0  ;;  %vm516_vm13 = vcmp.eq.s32.totalorder %v2020_v1, %v2148_v45 }
  0x7a   : > { %vm518_vm14 = vcmp.eq.s32.totalorder %v2029_v4, %v2148_v45  ;;  %vm743_vm15 = vcmp.eq.s32.totalorder %v2020_v1, %v2155_v48  ;;  %v1118_v25 = vadd.f32 %v1054_v16, %v891_v17  ;;  %v599_v32 = vsel %vm516_vm13, %v2134_v39, 0.0 }
  0x7b   : > { %v1120_v21 = vadd.f32 %v1056_v22, %v893_v18  ;;  %v601_v36 = vsel %vm518_vm14, %v2134_v39, 0.0  ;;  %v663_v37 = vadd.f32 %v599_v32, %v436_v23  ;;  %vm745_vm0 = vcmp.eq.s32.totalorder %v2029_v4, %v2155_v48 }
  0x7c   : > { %v665_v38 = vadd.f32 %v601_v36, %v438_v24  ;;  %v826_v42 = vsel %vm743_vm15, %v2163_v52, 0.0  ;;  %v828_v47 = vsel %vm745_vm0, %v2163_v52, 0.0  ;;  %vm970_vm1 = vcmp.eq.s32.totalorder %v2020_v1, %v2172_v57 }
  0x7d   : > { %v1550_v43 = vpack.c.bf16 %v1120_v21, %v1118_v25  ;;  %vm972_vm2 = vcmp.eq.s32.totalorder %v2029_v4, %v2172_v57  ;;  %v890_v50 = vadd.f32 %v826_v42, %v663_v37  ;;  %v1053_v53 = vsel %vm970_vm1, %v2182_v59, 0.0 }
  0x7e   : > { %v892_v51 = vadd.f32 %v828_v47, %v665_v38  ;;  %v1055_v54 = vsel %vm972_vm2, %v2182_v59, 0.0  ;;  %vm358_vm3 = vcmp.eq.s32.totalorder %v2032_v5, %v2127_v31  ;;  %vm360_vm4 = vcmp.eq.s32.totalorder %v2035_v6, %v2127_v31 }
  0x7f   : > { %1551 = vmatprep.subr.bf16.mxu0 %v1550_v43  ;;  %vm521_vm5 = vcmp.eq.s32.totalorder %v2032_v5, %v2151_v46  ;;  %vm523_vm6 = vcmp.eq.s32.totalorder %v2035_v6, %v2151_v46  ;;  %v1117_v4 = vadd.f32 %v1053_v53, %v890_v50  ;;  %v441_v60 = vsel %vm358_vm3, %v2145_v44, 0.0 }
  0x80   : > { %v1119_v55 = vadd.f32 %v1055_v54, %v892_v51  ;;  %v443_v61 = vsel %vm360_vm4, %v2145_v44, 0.0  ;;  %v604_v62 = vsel %vm521_vm5, %v2140_v41, 0.0  ;;  %v606_v63 = vsel %vm523_vm6, %v2140_v41, 0.0 }
  0x81   : > { %vm748_vm7 = vcmp.eq.s32.totalorder %v2032_v5, %v2158_v49  ;;  %vm750_vm8 = vcmp.eq.s32.totalorder %v2035_v6, %v2158_v49  ;;  %v668_v0 = vadd.f32 %v604_v62, %v441_v60  ;;  %v670_v9 = vadd.f32 %v606_v63, %v443_v61 }
  0x82   : > { %v1552_v2 = vpack.c.bf16 %v1119_v55, %v1117_v4  ;;  %v831_v14 = vsel %vm748_vm7, %v2169_v56, 0.0  ;;  %v833_v16 = vsel %vm750_vm8, %v2169_v56, 0.0  ;;  %vm975_vm9 = vcmp.eq.s32.totalorder %v2032_v5, %v2179_v58 }
  0x83   : > { %vm977_vm10 = vcmp.eq.s32.totalorder %v2035_v6, %v2179_v58  ;;  %vm357_vm11 = vcmp.eq.s32.totalorder %v2032_v5, %v2124_v30  ;;  %v895_v17 = vadd.f32 %v831_v14, %v668_v0  ;;  %v897_v18 = vadd.f32 %v833_v16, %v670_v9 }
  0x84   : > { %1553 = vmatpush1.bf16.msra.mxu0 %v1552_v2  ;;  %v1058_v22 = vsel %vm975_vm9, %v2185_v3, 0.0  ;;  %v1060_v23 = vsel %vm977_vm10, %v2185_v3, 0.0  ;;  %vm359_vm12 = vcmp.eq.s32.totalorder %v2035_v6, %v2124_v30  ;;  %v440_v24 = vsel %vm357_vm11, %v2137_v40, 0.0 }
  0x85   : > { %vm520_vm13 = vcmp.eq.s32.totalorder %v2032_v5, %v2148_v45  ;;  %vm522_vm14 = vcmp.eq.s32.totalorder %v2035_v6, %v2148_v45  ;;  %v1122_v25 = vadd.f32 %v1058_v22, %v895_v17  ;;  %v1124_v21 = vadd.f32 %v1060_v23, %v897_v18 }
  0x86   : > { %v442_v32 = vsel %vm359_vm12, %v2137_v40, 0.0  ;;  %v603_v36 = vsel %vm520_vm13, %v2134_v39, 0.0  ;;  %v605_v37 = vsel %vm522_vm14, %v2134_v39, 0.0  ;;  %vm747_vm15 = vcmp.eq.s32.totalorder %v2032_v5, %v2155_v48 }
  0x87   : > { %v667_v38 = vadd.f32 %v603_v36, %v440_v24  ;;  %vm749_vm0 = vcmp.eq.s32.totalorder %v2035_v6, %v2155_v48  ;;  %v1554_v42 = vpack.c.bf16 %v1124_v21, %v1122_v25  ;;  %v669_v43 = vadd.f32 %v605_v37, %v442_v32 }
  0x88   : > { %v830_v47 = vsel %vm747_vm15, %v2163_v52, 0.0  ;;  %v832_v50 = vsel %vm749_vm0, %v2163_v52, 0.0  ;;  %vm974_vm1 = vcmp.eq.s32.totalorder %v2032_v5, %v2172_v57  ;;  %vm976_vm2 = vcmp.eq.s32.totalorder %v2035_v6, %v2172_v57 }
  0x89   : > { %v894_v51 = vadd.f32 %v830_v47, %v667_v38  ;;  %vm362_vm3 = vcmp.eq.s32.totalorder %v2038_v7, %v2127_v31  ;;  %1555 = vmatprep.subr.bf16.mxu0 %v1554_v42  ;;  %v896_v53 = vadd.f32 %v832_v50, %v669_v43  ;;  %v1057_v54 = vsel %vm974_vm1, %v2182_v59, 0.0 }
  0x8a   : > { %v1059_v4 = vsel %vm976_vm2, %v2182_v59, 0.0  ;;  %vm364_vm4 = vcmp.eq.s32.totalorder %v2041_v8, %v2127_v31  ;;  %v445_v60 = vsel %vm362_vm3, %v2145_v44, 0.0  ;;  %vm525_vm5 = vcmp.eq.s32.totalorder %v2038_v7, %v2151_v46 }
  0x8b   : > { %v1121_v55 = vadd.f32 %v1057_v54, %v894_v51  ;;  %v447_v5 = vsel %vm364_vm4, %v2145_v44, 0.0  ;;  %v1123_v6 = vadd.f32 %v1059_v4, %v896_v53  ;;  %vm527_vm6 = vcmp.eq.s32.totalorder %v2041_v8, %v2151_v46 }
  0x8c   : > { %v608_v61 = vsel %vm525_vm5, %v2140_v41, 0.0  ;;  %vm752_vm7 = vcmp.eq.s32.totalorder %v2038_v7, %v2158_v49  ;;  %v610_v62 = vsel %vm527_vm6, %v2140_v41, 0.0  ;;  %vm754_vm8 = vcmp.eq.s32.totalorder %v2041_v8, %v2158_v49 }
  0x8d   : > { %v672_v63 = vadd.f32 %v608_v61, %v445_v60  ;;  %v835_v2 = vsel %vm752_vm7, %v2169_v56, 0.0  ;;  %v1556_v0 = vpack.c.bf16 %v1123_v6, %v1121_v55  ;;  %v674_v9 = vadd.f32 %v610_v62, %v447_v5 }
  0x8e   : > { %v837_v14 = vsel %vm754_vm8, %v2169_v56, 0.0  ;;  %vm979_vm9 = vcmp.eq.s32.totalorder %v2038_v7, %v2179_v58  ;;  %vm981_vm10 = vcmp.eq.s32.totalorder %v2041_v8, %v2179_v58  ;;  %vm361_vm11 = vcmp.eq.s32.totalorder %v2038_v7, %v2124_v30 }
  0x8f   : > { %v899_v16 = vadd.f32 %v835_v2, %v672_v63  ;;  %v1062_v17 = vsel %vm979_vm9, %v2185_v3, 0.0  ;;  %1557 = vmatpush1.bf16.msra.mxu0 %v1556_v0  ;;  %v901_v18 = vadd.f32 %v837_v14, %v674_v9  ;;  %v1064_v22 = vsel %vm981_vm10, %v2185_v3, 0.0 }
  0x90   : > { %vm363_vm12 = vcmp.eq.s32.totalorder %v2041_v8, %v2124_v30  ;;  %v444_v23 = vsel %vm361_vm11, %v2137_v40, 0.0  ;;  %vm524_vm13 = vcmp.eq.s32.totalorder %v2038_v7, %v2148_v45  ;;  %vm526_vm14 = vcmp.eq.s32.totalorder %v2041_v8, %v2148_v45 }
  0x91   : > { %v1126_v24 = vadd.f32 %v1062_v17, %v899_v16  ;;  %v446_v25 = vsel %vm363_vm12, %v2137_v40, 0.0  ;;  %v1128_v21 = vadd.f32 %v1064_v22, %v901_v18  ;;  %v607_v32 = vsel %vm524_vm13, %v2134_v39, 0.0 }
  0x92   : > { %v609_v36 = vsel %vm526_vm14, %v2134_v39, 0.0  ;;  %vm751_vm15 = vcmp.eq.s32.totalorder %v2038_v7, %v2155_v48  ;;  %v671_v37 = vadd.f32 %v607_v32, %v444_v23  ;;  %vm753_vm0 = vcmp.eq.s32.totalorder %v2041_v8, %v2155_v48 }
  0x93   : > { %v673_v38 = vadd.f32 %v609_v36, %v446_v25  ;;  %v834_v42 = vsel %vm751_vm15, %v2163_v52, 0.0  ;;  %v1558_v43 = vpack.c.bf16 %v1128_v21, %v1126_v24  ;;  %v836_v47 = vsel %vm753_vm0, %v2163_v52, 0.0 }
  0x94   : > { %vm978_vm1 = vcmp.eq.s32.totalorder %v2038_v7, %v2172_v57  ;;  %vm980_vm2 = vcmp.eq.s32.totalorder %v2041_v8, %v2172_v57  ;;  %v898_v50 = vadd.f32 %v834_v42, %v671_v37  ;;  %vm366_vm3 = vcmp.eq.s32.totalorder %v2044_v10, %v2127_v31 }
  0x95   : > { %v900_v51 = vadd.f32 %v836_v47, %v673_v38  ;;  %v1061_v53 = vsel %vm978_vm1, %v2182_v59, 0.0  ;;  %v1063_v54 = vsel %vm980_vm2, %v2182_v59, 0.0  ;;  %1559 = vmatprep.subr.bf16.mxu0 %v1558_v43  ;;  %vm368_vm4 = vcmp.eq.s32.totalorder %v2047_v11, %v2127_v31 }
  0x96   : > { %vm529_vm5 = vcmp.eq.s32.totalorder %v2044_v10, %v2151_v46  ;;  %vm531_vm6 = vcmp.eq.s32.totalorder %v2047_v11, %v2151_v46  ;;  %v1125_v7 = vadd.f32 %v1061_v53, %v898_v50  ;;  %v449_v4 = vsel %vm366_vm3, %v2145_v44, 0.0 }
  0x97   : > { %v1127_v8 = vadd.f32 %v1063_v54, %v900_v51  ;;  %v451_v55 = vsel %vm368_vm4, %v2145_v44, 0.0  ;;  %v612_v60 = vsel %vm529_vm5, %v2140_v41, 0.0  ;;  %v614_v5 = vsel %vm531_vm6, %v2140_v41, 0.0 }
  0x98   : > { %vm756_vm7 = vcmp.eq.s32.totalorder %v2044_v10, %v2158_v49  ;;  %vm758_vm8 = vcmp.eq.s32.totalorder %v2047_v11, %v2158_v49  ;;  %v676_v61 = vadd.f32 %v612_v60, %v449_v4  ;;  %v678_v62 = vadd.f32 %v614_v5, %v451_v55 }
  0x99   : > { %v1560_v6 = vpack.c.bf16 %v1127_v8, %v1125_v7  ;;  %v839_v63 = vsel %vm756_vm7, %v2169_v56, 0.0  ;;  %v841_v2 = vsel %vm758_vm8, %v2169_v56, 0.0  ;;  %vm983_vm9 = vcmp.eq.s32.totalorder %v2044_v10, %v2179_v58 }
  0x9a   : > { %vm985_vm10 = vcmp.eq.s32.totalorder %v2047_v11, %v2179_v58  ;;  %vm365_vm11 = vcmp.eq.s32.totalorder %v2044_v10, %v2124_v30  ;;  %v903_v0 = vadd.f32 %v839_v63, %v676_v61  ;;  %v905_v9 = vadd.f32 %v841_v2, %v678_v62 }
  0x9b   : > { %1561 = vmatpush1.bf16.msra.mxu0 %v1560_v6  ;;  %v1066_v14 = vsel %vm983_vm9, %v2185_v3, 0.0  ;;  %v1068_v16 = vsel %vm985_vm10, %v2185_v3, 0.0  ;;  %vm367_vm12 = vcmp.eq.s32.totalorder %v2047_v11, %v2124_v30  ;;  %v448_v17 = vsel %vm365_vm11, %v2137_v40, 0.0 }
  0x9c   : > { %vm528_vm13 = vcmp.eq.s32.totalorder %v2044_v10, %v2148_v45  ;;  %vm530_vm14 = vcmp.eq.s32.totalorder %v2047_v11, %v2148_v45  ;;  %v1130_v18 = vadd.f32 %v1066_v14, %v903_v0  ;;  %v1132_v22 = vadd.f32 %v1068_v16, %v905_v9 }
  0x9d   : > { %v450_v23 = vsel %vm367_vm12, %v2137_v40, 0.0  ;;  %v611_v24 = vsel %vm528_vm13, %v2134_v39, 0.0  ;;  %v613_v25 = vsel %vm530_vm14, %v2134_v39, 0.0  ;;  %vm755_vm15 = vcmp.eq.s32.totalorder %v2044_v10, %v2155_v48 }
  0x9e   : > { %v675_v21 = vadd.f32 %v611_v24, %v448_v17  ;;  %vm757_vm0 = vcmp.eq.s32.totalorder %v2047_v11, %v2155_v48  ;;  %v1562_v32 = vpack.c.bf16 %v1132_v22, %v1130_v18  ;;  %v677_v36 = vadd.f32 %v613_v25, %v450_v23 }
  0x9f   : > { %v838_v37 = vsel %vm755_vm15, %v2163_v52, 0.0  ;;  %v840_v38 = vsel %vm757_vm0, %v2163_v52, 0.0  ;;  %vm982_vm1 = vcmp.eq.s32.totalorder %v2044_v10, %v2172_v57  ;;  %vm984_vm2 = vcmp.eq.s32.totalorder %v2047_v11, %v2172_v57 }
  0xa0   : > { %v902_v42 = vadd.f32 %v838_v37, %v675_v21  ;;  %vm370_vm3 = vcmp.eq.s32.totalorder %v2050_v12, %v2127_v31  ;;  %1563 = vmatprep.subr.bf16.mxu0 %v1562_v32  ;;  %v904_v43 = vadd.f32 %v840_v38, %v677_v36  ;;  %v1065_v47 = vsel %vm982_vm1, %v2182_v59, 0.0 }
  0xa1   : > { %v1067_v50 = vsel %vm984_vm2, %v2182_v59, 0.0  ;;  %vm372_vm4 = vcmp.eq.s32.totalorder %v2053_v13, %v2127_v31  ;;  %v453_v53 = vsel %vm370_vm3, %v2145_v44, 0.0  ;;  %vm533_vm5 = vcmp.eq.s32.totalorder %v2050_v12, %v2151_v46 }
  0xa2   : > { %v1129_v51 = vadd.f32 %v1065_v47, %v902_v42  ;;  %v455_v10 = vsel %vm372_vm4, %v2145_v44, 0.0  ;;  %v1131_v11 = vadd.f32 %v1067_v50, %v904_v43  ;;  %vm535_vm6 = vcmp.eq.s32.totalorder %v2053_v13, %v2151_v46 }
  0xa3   : > { %v616_v54 = vsel %vm533_vm5, %v2140_v41, 0.0  ;;  %vm760_vm7 = vcmp.eq.s32.totalorder %v2050_v12, %v2158_v49  ;;  %v618_v7 = vsel %vm535_vm6, %v2140_v41, 0.0  ;;  %vm762_vm8 = vcmp.eq.s32.totalorder %v2053_v13, %v2158_v49 }
  0xa4   : > { %v680_v8 = vadd.f32 %v616_v54, %v453_v53  ;;  %v843_v4 = vsel %vm760_vm7, %v2169_v56, 0.0  ;;  %v1564_v55 = vpack.c.bf16 %v1131_v11, %v1129_v51  ;;  %v682_v60 = vadd.f32 %v618_v7, %v455_v10 }
  0xa5   : > { %v845_v5 = vsel %vm762_vm8, %v2169_v56, 0.0  ;;  %vm987_vm9 = vcmp.eq.s32.totalorder %v2050_v12, %v2179_v58  ;;  %vm989_vm10 = vcmp.eq.s32.totalorder %v2053_v13, %v2179_v58  ;;  %vm369_vm11 = vcmp.eq.s32.totalorder %v2050_v12, %v2124_v30 }
  0xa6   : > { %v907_v6 = vadd.f32 %v843_v4, %v680_v8  ;;  %v1070_v61 = vsel %vm987_vm9, %v2185_v3, 0.0  ;;  %1565 = vmatpush1.bf16.msra.mxu0 %v1564_v55  ;;  %v909_v62 = vadd.f32 %v845_v5, %v682_v60  ;;  %v1072_v63 = vsel %vm989_vm10, %v2185_v3, 0.0 }
  0xa7   : > { %vm371_vm12 = vcmp.eq.s32.totalorder %v2053_v13, %v2124_v30  ;;  %v452_v2 = vsel %vm369_vm11, %v2137_v40, 0.0  ;;  %vm532_vm13 = vcmp.eq.s32.totalorder %v2050_v12, %v2148_v45  ;;  %vm534_vm14 = vcmp.eq.s32.totalorder %v2053_v13, %v2148_v45 }
  0xa8   : > { %v1134_v0 = vadd.f32 %v1070_v61, %v907_v6  ;;  %v454_v9 = vsel %vm371_vm12, %v2137_v40, 0.0  ;;  %v1136_v14 = vadd.f32 %v1072_v63, %v909_v62  ;;  %v615_v16 = vsel %vm532_vm13, %v2134_v39, 0.0 }
  0xa9   : > { %v617_v17 = vsel %vm534_vm14, %v2134_v39, 0.0  ;;  %vm759_vm15 = vcmp.eq.s32.totalorder %v2050_v12, %v2155_v48  ;;  %v679_v18 = vadd.f32 %v615_v16, %v452_v2  ;;  %vm761_vm0 = vcmp.eq.s32.totalorder %v2053_v13, %v2155_v48 }
  0xaa   : > { %v681_v22 = vadd.f32 %v617_v17, %v454_v9  ;;  %v842_v23 = vsel %vm759_vm15, %v2163_v52, 0.0  ;;  %v1566_v24 = vpack.c.bf16 %v1136_v14, %v1134_v0  ;;  %v844_v25 = vsel %vm761_vm0, %v2163_v52, 0.0 }
  0xab   : > { %vm986_vm1 = vcmp.eq.s32.totalorder %v2050_v12, %v2172_v57  ;;  %vm988_vm2 = vcmp.eq.s32.totalorder %v2053_v13, %v2172_v57  ;;  %v906_v21 = vadd.f32 %v842_v23, %v679_v18  ;;  %vm374_vm3 = vcmp.eq.s32.totalorder %v2056_v15, %v2127_v31 }
  0xac   : > { %v908_v32 = vadd.f32 %v844_v25, %v681_v22  ;;  %v1069_v36 = vsel %vm986_vm1, %v2182_v59, 0.0  ;;  %v1071_v37 = vsel %vm988_vm2, %v2182_v59, 0.0  ;;  %1567 = vmatprep.subr.bf16.mxu0 %v1566_v24  ;;  %vm376_vm4 = vcmp.eq.s32.totalorder %v2059_v19, %v2127_v31 }
  0xad   : > { %vm537_vm5 = vcmp.eq.s32.totalorder %v2056_v15, %v2151_v46  ;;  %vm539_vm6 = vcmp.eq.s32.totalorder %v2059_v19, %v2151_v46  ;;  %v1133_v12 = vadd.f32 %v1069_v36, %v906_v21  ;;  %v457_v38 = vsel %vm374_vm3, %v2145_v44, 0.0 }
  0xae   : > { %v1135_v13 = vadd.f32 %v1071_v37, %v908_v32  ;;  %v459_v42 = vsel %vm376_vm4, %v2145_v44, 0.0  ;;  %v620_v43 = vsel %vm537_vm5, %v2140_v41, 0.0  ;;  %v622_v47 = vsel %vm539_vm6, %v2140_v41, 0.0 }
  0xaf   : > { %vm764_vm7 = vcmp.eq.s32.totalorder %v2056_v15, %v2158_v49  ;;  %vm766_vm8 = vcmp.eq.s32.totalorder %v2059_v19, %v2158_v49  ;;  %v684_v51 = vadd.f32 %v620_v43, %v457_v38  ;;  %v686_v53 = vadd.f32 %v622_v47, %v459_v42 }
  0xb0   : > { %v1568_v50 = vpack.c.bf16 %v1135_v13, %v1133_v12  ;;  %v847_v10 = vsel %vm764_vm7, %v2169_v56, 0.0  ;;  %v849_v11 = vsel %vm766_vm8, %v2169_v56, 0.0  ;;  %vm991_vm9 = vcmp.eq.s32.totalorder %v2056_v15, %v2179_v58 }
  0xb1   : > { %vm993_vm10 = vcmp.eq.s32.totalorder %v2059_v19, %v2179_v58  ;;  %vm373_vm11 = vcmp.eq.s32.totalorder %v2056_v15, %v2124_v30  ;;  %v911_v54 = vadd.f32 %v847_v10, %v684_v51  ;;  %v913_v7 = vadd.f32 %v849_v11, %v686_v53 }
  0xb2   : > { %1569 = vmatpush1.bf16.msra.mxu0 %v1568_v50  ;;  %v1074_v8 = vsel %vm991_vm9, %v2185_v3, 0.0  ;;  %v1076_v4 = vsel %vm993_vm10, %v2185_v3, 0.0  ;;  %vm375_vm12 = vcmp.eq.s32.totalorder %v2059_v19, %v2124_v30  ;;  %v456_v55 = vsel %vm373_vm11, %v2137_v40, 0.0 }
  0xb3   : > { %vm536_vm13 = vcmp.eq.s32.totalorder %v2056_v15, %v2148_v45  ;;  %vm538_vm14 = vcmp.eq.s32.totalorder %v2059_v19, %v2148_v45  ;;  %v1138_v60 = vadd.f32 %v1074_v8, %v911_v54  ;;  %v1140_v5 = vadd.f32 %v1076_v4, %v913_v7 }
  0xb4   : > { %v458_v6 = vsel %vm375_vm12, %v2137_v40, 0.0  ;;  %v619_v61 = vsel %vm536_vm13, %v2134_v39, 0.0  ;;  %v621_v62 = vsel %vm538_vm14, %v2134_v39, 0.0  ;;  %vm763_vm15 = vcmp.eq.s32.totalorder %v2056_v15, %v2155_v48 }
  0xb5   : > { %v683_v63 = vadd.f32 %v619_v61, %v456_v55  ;;  %vm765_vm0 = vcmp.eq.s32.totalorder %v2059_v19, %v2155_v48  ;;  %v1570_v2 = vpack.c.bf16 %v1140_v5, %v1138_v60  ;;  %v685_v0 = vadd.f32 %v621_v62, %v458_v6 }
  0xb6   : > { %v846_v9 = vsel %vm763_vm15, %v2163_v52, 0.0  ;;  %v848_v14 = vsel %vm765_vm0, %v2163_v52, 0.0  ;;  %vm990_vm1 = vcmp.eq.s32.totalorder %v2056_v15, %v2172_v57  ;;  %vm992_vm2 = vcmp.eq.s32.totalorder %v2059_v19, %v2172_v57 }
  0xb7   : > { %v910_v16 = vadd.f32 %v846_v9, %v683_v63  ;;  %vm378_vm3 = vcmp.eq.s32.totalorder %v2062_v20, %v2127_v31  ;;  %1571 = vmatprep.subr.bf16.mxu0 %v1570_v2  ;;  %v912_v17 = vadd.f32 %v848_v14, %v685_v0  ;;  %v1073_v18 = vsel %vm990_vm1, %v2182_v59, 0.0 }
  0xb8   : > { %v1075_v22 = vsel %vm992_vm2, %v2182_v59, 0.0  ;;  %vm380_vm4 = vcmp.eq.s32.totalorder %v2069_v26, %v2127_v31  ;;  %v461_v24 = vsel %vm378_vm3, %v2145_v44, 0.0  ;;  %vm541_vm5 = vcmp.eq.s32.totalorder %v2062_v20, %v2151_v46 }
  0xb9   : > { %v1137_v23 = vadd.f32 %v1073_v18, %v910_v16  ;;  %v463_v15 = vsel %vm380_vm4, %v2145_v44, 0.0  ;;  %v1139_v19 = vadd.f32 %v1075_v22, %v912_v17  ;;  %vm543_vm6 = vcmp.eq.s32.totalorder %v2069_v26, %v2151_v46 }
  0xba   : > { %v624_v25 = vsel %vm541_vm5, %v2140_v41, 0.0  ;;  %vm768_vm7 = vcmp.eq.s32.totalorder %v2062_v20, %v2158_v49  ;;  %v626_v21 = vsel %vm543_vm6, %v2140_v41, 0.0  ;;  %vm770_vm8 = vcmp.eq.s32.totalorder %v2069_v26, %v2158_v49 }
  0xbb   : > { %v688_v32 = vadd.f32 %v624_v25, %v461_v24  ;;  %v851_v36 = vsel %vm768_vm7, %v2169_v56, 0.0  ;;  %v1572_v37 = vpack.c.bf16 %v1139_v19, %v1137_v23  ;;  %v690_v12 = vadd.f32 %v626_v21, %v463_v15 }
  0xbc   : > { %v853_v13 = vsel %vm770_vm8, %v2169_v56, 0.0  ;;  %vm995_vm9 = vcmp.eq.s32.totalorder %v2062_v20, %v2179_v58  ;;  %vm997_vm10 = vcmp.eq.s32.totalorder %v2069_v26, %v2179_v58  ;;  %vm377_vm11 = vcmp.eq.s32.totalorder %v2062_v20, %v2124_v30 }
  0xbd   : > { %v915_v38 = vadd.f32 %v851_v36, %v688_v32  ;;  %v1078_v42 = vsel %vm995_vm9, %v2185_v3, 0.0  ;;  %1573 = vmatpush1.bf16.msra.mxu0 %v1572_v37  ;;  %v917_v43 = vadd.f32 %v853_v13, %v690_v12  ;;  %v1080_v47 = vsel %vm997_vm10, %v2185_v3, 0.0 }
  0xbe   : > { %vm379_vm12 = vcmp.eq.s32.totalorder %v2069_v26, %v2124_v30  ;;  %v460_v50 = vsel %vm377_vm11, %v2137_v40, 0.0  ;;  %vm540_vm13 = vcmp.eq.s32.totalorder %v2062_v20, %v2148_v45  ;;  %vm542_vm14 = vcmp.eq.s32.totalorder %v2069_v26, %v2148_v45 }
  0xbf   : > { %v1142_v51 = vadd.f32 %v1078_v42, %v915_v38  ;;  %v462_v53 = vsel %vm379_vm12, %v2137_v40, 0.0  ;;  %v1144_v10 = vadd.f32 %v1080_v47, %v917_v43  ;;  %v623_v11 = vsel %vm540_vm13, %v2134_v39, 0.0 }
  0xc0   : > { %v625_v54 = vsel %vm542_vm14, %v2134_v39, 0.0  ;;  %vm767_vm15 = vcmp.eq.s32.totalorder %v2062_v20, %v2155_v48  ;;  %v687_v7 = vadd.f32 %v623_v11, %v460_v50  ;;  %vm769_vm0 = vcmp.eq.s32.totalorder %v2069_v26, %v2155_v48 }
  0xc1   : > { %v689_v8 = vadd.f32 %v625_v54, %v462_v53  ;;  %v850_v4 = vsel %vm767_vm15, %v2163_v52, 0.0  ;;  %v1574_v55 = vpack.c.bf16 %v1144_v10, %v1142_v51  ;;  %v852_v60 = vsel %vm769_vm0, %v2163_v52, 0.0 }
  0xc2   : > { %vm994_vm1 = vcmp.eq.s32.totalorder %v2062_v20, %v2172_v57  ;;  %vm996_vm2 = vcmp.eq.s32.totalorder %v2069_v26, %v2172_v57  ;;  %v914_v5 = vadd.f32 %v850_v4, %v687_v7  ;;  %vm382_vm3 = vcmp.eq.s32.totalorder %v2072_v27, %v2127_v31 }
  0xc3   : > { %v916_v6 = vadd.f32 %v852_v60, %v689_v8  ;;  %v1077_v61 = vsel %vm994_vm1, %v2182_v59, 0.0  ;;  %v1079_v62 = vsel %vm996_vm2, %v2182_v59, 0.0  ;;  %1575 = vmatprep.subr.bf16.mxu0 %v1574_v55  ;;  %vm384_vm4 = vcmp.eq.s32.totalorder %v2075_v28, %v2127_v31 }
  0xc4   : > { %vm545_vm5 = vcmp.eq.s32.totalorder %v2072_v27, %v2151_v46  ;;  %vm547_vm6 = vcmp.eq.s32.totalorder %v2075_v28, %v2151_v46  ;;  %v1141_v20 = vadd.f32 %v1077_v61, %v914_v5  ;;  %v465_v63 = vsel %vm382_vm3, %v2145_v44, 0.0 }
  0xc5   : > { %v1143_v26 = vadd.f32 %v1079_v62, %v916_v6  ;;  %v467_v2 = vsel %vm384_vm4, %v2145_v44, 0.0  ;;  %v628_v0 = vsel %vm545_vm5, %v2140_v41, 0.0  ;;  %v630_v9 = vsel %vm547_vm6, %v2140_v41, 0.0 }
  0xc6   : > { %vm772_vm7 = vcmp.eq.s32.totalorder %v2072_v27, %v2158_v49  ;;  %vm774_vm8 = vcmp.eq.s32.totalorder %v2075_v28, %v2158_v49  ;;  %v692_v16 = vadd.f32 %v628_v0, %v465_v63  ;;  %v694_v17 = vadd.f32 %v630_v9, %v467_v2 }
  0xc7   : > { %v1576_v14 = vpack.c.bf16 %v1143_v26, %v1141_v20  ;;  %v855_v18 = vsel %vm772_vm7, %v2169_v56, 0.0  ;;  %v857_v22 = vsel %vm774_vm8, %v2169_v56, 0.0  ;;  %vm999_vm9 = vcmp.eq.s32.totalorder %v2072_v27, %v2179_v58 }
  0xc8   : > { %vm1001_vm10 = vcmp.eq.s32.totalorder %v2075_v28, %v2179_v58  ;;  %vm381_vm11 = vcmp.eq.s32.totalorder %v2072_v27, %v2124_v30  ;;  %v919_v23 = vadd.f32 %v855_v18, %v692_v16  ;;  %v921_v24 = vadd.f32 %v857_v22, %v694_v17 }
  0xc9   : > { %1577 = vmatpush1.bf16.msra.mxu0 %v1576_v14  ;;  %v1082_v15 = vsel %vm999_vm9, %v2185_v3, 0.0  ;;  %v1084_v19 = vsel %vm1001_vm10, %v2185_v3, 0.0  ;;  %vm383_vm12 = vcmp.eq.s32.totalorder %v2075_v28, %v2124_v30  ;;  %v464_v25 = vsel %vm381_vm11, %v2137_v40, 0.0 }
  0xca   : > { %vm544_vm13 = vcmp.eq.s32.totalorder %v2072_v27, %v2148_v45  ;;  %vm546_vm14 = vcmp.eq.s32.totalorder %v2075_v28, %v2148_v45  ;;  %v1146_v21 = vadd.f32 %v1082_v15, %v919_v23  ;;  %v1148_v32 = vadd.f32 %v1084_v19, %v921_v24 }
  0xcb   : > { %v466_v36 = vsel %vm383_vm12, %v2137_v40, 0.0  ;;  %v627_v37 = vsel %vm544_vm13, %v2134_v39, 0.0  ;;  %v629_v12 = vsel %vm546_vm14, %v2134_v39, 0.0  ;;  %vm771_vm15 = vcmp.eq.s32.totalorder %v2072_v27, %v2155_v48 }
  0xcc   : > { %v691_v13 = vadd.f32 %v627_v37, %v464_v25  ;;  %vm773_vm0 = vcmp.eq.s32.totalorder %v2075_v28, %v2155_v48  ;;  %v1578_v38 = vpack.c.bf16 %v1148_v32, %v1146_v21  ;;  %v693_v42 = vadd.f32 %v629_v12, %v466_v36 }
  0xcd   : > { %v854_v43 = vsel %vm771_vm15, %v2163_v52, 0.0  ;;  %v856_v47 = vsel %vm773_vm0, %v2163_v52, 0.0  ;;  %vm998_vm1 = vcmp.eq.s32.totalorder %v2072_v27, %v2172_v57  ;;  %vm1000_vm2 = vcmp.eq.s32.totalorder %v2075_v28, %v2172_v57 }
  0xce   : > { %v918_v50 = vadd.f32 %v854_v43, %v691_v13  ;;  %vm386_vm3 = vcmp.eq.s32.totalorder %v2078_v29, %v2127_v31  ;;  %1579 = vmatprep.subr.bf16.mxu0 %v1578_v38  ;;  %v920_v51 = vadd.f32 %v856_v47, %v693_v42  ;;  %v1081_v53 = vsel %vm998_vm1, %v2182_v59, 0.0 }
  0xcf   : > { %v1083_v10 = vsel %vm1000_vm2, %v2182_v59, 0.0  ;;  %vm388_vm4 = vcmp.eq.s32.totalorder %v2083_v33, %v2127_v31  ;;  %v469_v54 = vsel %vm386_vm3, %v2145_v44, 0.0  ;;  %vm549_vm5 = vcmp.eq.s32.totalorder %v2078_v29, %v2151_v46 }
  0xd0   : > { %v1145_v11 = vadd.f32 %v1081_v53, %v918_v50  ;;  %v471_v27 = vsel %vm388_vm4, %v2145_v44, 0.0  ;;  %v1147_v28 = vadd.f32 %v1083_v10, %v920_v51  ;;  %vm551_vm6 = vcmp.eq.s32.totalorder %v2083_v33, %v2151_v46 }
  0xd1   : > { %v632_v7 = vsel %vm549_vm5, %v2140_v41, 0.0  ;;  %vm776_vm7 = vcmp.eq.s32.totalorder %v2078_v29, %v2158_v49  ;;  %v634_v8 = vsel %vm551_vm6, %v2140_v41, 0.0  ;;  %vm778_vm8 = vcmp.eq.s32.totalorder %v2083_v33, %v2158_v49 }
  0xd2   : > { %v696_v4 = vadd.f32 %v632_v7, %v469_v54  ;;  %v859_v55 = vsel %vm776_vm7, %v2169_v56, 0.0  ;;  %v1580_v60 = vpack.c.bf16 %v1147_v28, %v1145_v11  ;;  %v698_v5 = vadd.f32 %v634_v8, %v471_v27 }
  0xd3   : > { %v861_v6 = vsel %vm778_vm8, %v2169_v56, 0.0  ;;  %vm1003_vm9 = vcmp.eq.s32.totalorder %v2078_v29, %v2179_v58  ;;  %vm1005_vm10 = vcmp.eq.s32.totalorder %v2083_v33, %v2179_v58  ;;  %vm385_vm11 = vcmp.eq.s32.totalorder %v2078_v29, %v2124_v30 }
  0xd4   : > { %v923_v61 = vadd.f32 %v859_v55, %v696_v4  ;;  %v1086_v62 = vsel %vm1003_vm9, %v2185_v3, 0.0  ;;  %1581 = vmatpush1.bf16.msra.mxu0 %v1580_v60  ;;  %v925_v20 = vadd.f32 %v861_v6, %v698_v5  ;;  %v1088_v26 = vsel %vm1005_vm10, %v2185_v3, 0.0 }
  0xd5   : > { %vm387_vm12 = vcmp.eq.s32.totalorder %v2083_v33, %v2124_v30  ;;  %v468_v63 = vsel %vm385_vm11, %v2137_v40, 0.0  ;;  %vm548_vm13 = vcmp.eq.s32.totalorder %v2078_v29, %v2148_v45  ;;  %vm550_vm14 = vcmp.eq.s32.totalorder %v2083_v33, %v2148_v45 }
  0xd6   : > { %v1150_v2 = vadd.f32 %v1086_v62, %v923_v61  ;;  %v470_v0 = vsel %vm387_vm12, %v2137_v40, 0.0  ;;  %v1152_v9 = vadd.f32 %v1088_v26, %v925_v20  ;;  %v631_v14 = vsel %vm548_vm13, %v2134_v39, 0.0 }
  0xd7   : > { %v633_v16 = vsel %vm550_vm14, %v2134_v39, 0.0  ;;  %vm775_vm15 = vcmp.eq.s32.totalorder %v2078_v29, %v2155_v48  ;;  %v695_v17 = vadd.f32 %v631_v14, %v468_v63  ;;  %vm777_vm0 = vcmp.eq.s32.totalorder %v2083_v33, %v2155_v48 }
  0xd8   : > { %v697_v18 = vadd.f32 %v633_v16, %v470_v0  ;;  %v858_v22 = vsel %vm775_vm15, %v2163_v52, 0.0  ;;  %v1582_v23 = vpack.c.bf16 %v1152_v9, %v1150_v2  ;;  %v860_v24 = vsel %vm777_vm0, %v2163_v52, 0.0 }
  0xd9   : > { %vm1002_vm1 = vcmp.eq.s32.totalorder %v2078_v29, %v2172_v57  ;;  %vm1004_vm2 = vcmp.eq.s32.totalorder %v2083_v33, %v2172_v57  ;;  %v922_v15 = vadd.f32 %v858_v22, %v695_v17  ;;  %vm390_vm3 = vcmp.eq.s32.totalorder %v2086_v34, %v2127_v31 }
  0xda   : > { %v924_v19 = vadd.f32 %v860_v24, %v697_v18  ;;  %v1085_v25 = vsel %vm1002_vm1, %v2182_v59, 0.0  ;;  %v1087_v21 = vsel %vm1004_vm2, %v2182_v59, 0.0  ;;  %1583 = vmatprep.subr.bf16.mxu0 %v1582_v23  ;;  %vm392_vm4 = vcmp.eq.s32.totalorder %v2089_v35, %v2127_v31 }
  0xdb   : > { %vm553_vm5 = vcmp.eq.s32.totalorder %v2086_v34, %v2151_v46  ;;  %vm555_vm6 = vcmp.eq.s32.totalorder %v2089_v35, %v2151_v46  ;;  %v1149_v29 = vadd.f32 %v1085_v25, %v922_v15  ;;  %v473_v32 = vsel %vm390_vm3, %v2145_v44, 0.0 }
  0xdc   : > { %v1151_v33 = vadd.f32 %v1087_v21, %v924_v19  ;;  %v475_v36 = vsel %vm392_vm4, %v2145_v44, 0.0  ;;  %v636_v37 = vsel %vm553_vm5, %v2140_v41, 0.0  ;;  %v638_v12 = vsel %vm555_vm6, %v2140_v41, 0.0 }
  0xdd   : > { %vm780_vm7 = vcmp.eq.s32.totalorder %v2086_v34, %v2158_v49  ;;  %vm782_vm8 = vcmp.eq.s32.totalorder %v2089_v35, %v2158_v49  ;;  %v700_v38 = vadd.f32 %v636_v37, %v473_v32  ;;  %v702_v42 = vadd.f32 %v638_v12, %v475_v36 }
  0xde   : > { %v1584_v13 = vpack.c.bf16 %v1151_v33, %v1149_v29  ;;  %v863_v43 = vsel %vm780_vm7, %v2169_v56, 0.0  ;;  %v865_v47 = vsel %vm782_vm8, %v2169_v56, 0.0  ;;  %vm1007_vm9 = vcmp.eq.s32.totalorder %v2086_v34, %v2179_v58 }
  0xdf   : > { %vm1009_vm10 = vcmp.eq.s32.totalorder %v2089_v35, %v2179_v58  ;;  %vm389_vm11 = vcmp.eq.s32.totalorder %v2086_v34, %v2124_v30  ;;  %v927_v50 = vadd.f32 %v863_v43, %v700_v38  ;;  %v929_v51 = vadd.f32 %v865_v47, %v702_v42 }
  0xe0   : > { %1585 = vmatpush1.bf16.msra.mxu0 %v1584_v13  ;;  %v1090_v53 = vsel %vm1007_vm9, %v2185_v3, 0.0  ;;  %v1092_v10 = vsel %vm1009_vm10, %v2185_v3, 0.0  ;;  %vm391_vm12 = vcmp.eq.s32.totalorder %v2089_v35, %v2124_v30  ;;  %v472_v11 = vsel %vm389_vm11, %v2137_v40, 0.0 }
  0xe1   : > { %vm552_vm13 = vcmp.eq.s32.totalorder %v2086_v34, %v2148_v45  ;;  %vm554_vm14 = vcmp.eq.s32.totalorder %v2089_v35, %v2148_v45  ;;  %v1154_v54 = vadd.f32 %v1090_v53, %v927_v50  ;;  %v1156_v27 = vadd.f32 %v1092_v10, %v929_v51 }
  0xe2   : > { %v474_v28 = vsel %vm391_vm12, %v2137_v40, 0.0  ;;  %v635_v7 = vsel %vm552_vm13, %v2134_v39, 0.0  ;;  %v637_v8 = vsel %vm554_vm14, %v2134_v39, 0.0  ;;  %vm779_vm15 = vcmp.eq.s32.totalorder %v2086_v34, %v2155_v48 }
  0xe3   : > { %v699_v4 = vadd.f32 %v635_v7, %v472_v11  ;;  %vm781_vm0 = vcmp.eq.s32.totalorder %v2089_v35, %v2155_v48  ;;  %v1586_v55 = vpack.c.bf16 %v1156_v27, %v1154_v54  ;;  %v701_v60 = vadd.f32 %v637_v8, %v474_v28 }
  0xe4   : > { %v862_v5 = vsel %vm779_vm15, %v2163_v52, 0.0  ;;  %v864_v6 = vsel %vm781_vm0, %v2163_v52, 0.0  ;;  %vm1006_vm1 = vcmp.eq.s32.totalorder %v2086_v34, %v2172_v57  ;;  %vm1008_vm2 = vcmp.eq.s32.totalorder %v2089_v35, %v2172_v57 }
  0xe5   : > { %v926_v61 = vadd.f32 %v862_v5, %v699_v4  ;;  %v325_v62 = vadd.s32 160, %v2020_v1  ;;  %1587 = vmatprep.subr.bf16.mxu0 %v1586_v55  ;;  %v928_v20 = vadd.f32 %v864_v6, %v701_v60  ;;  %v1089_v26 = vsel %vm1006_vm1, %v2182_v59, 0.0 }
  0xe6   : > { %v1091_v63 = vsel %vm1008_vm2, %v2182_v59, 0.0  ;;  %v326_v2 = vadd.s32 168, %v2020_v1  ;;  %v327_v51 = vadd.s32 176, %v2020_v1  ;;  %v328_v54 = vadd.s32 184, %v2020_v1 }
  0xe7   : > { %v1153_v0 = vadd.f32 %v1089_v26, %v926_v61  ;;  %vm394_vm3 = vcmp.eq.s32.totalorder %v325_v62, %v2127_v31  ;;  %vm557_vm4 = vcmp.eq.s32.totalorder %v325_v62, %v2151_v46  ;;  %vm784_vm5 = vcmp.eq.s32.totalorder %v325_v62, %v2158_v49 }
  0xe8   : > { %v1155_v34 = vadd.f32 %v1091_v63, %v928_v20  ;;  %vm396_vm6 = vcmp.eq.s32.totalorder %v326_v2, %v2127_v31  ;;  %v477_v35 = vsel %vm394_vm3, %v2145_v44, 0.0  ;;  %vm559_vm7 = vcmp.eq.s32.totalorder %v326_v2, %v2151_v46 }
  0xe9   : > { %v479_v9 = vsel %vm396_vm6, %v2145_v44, 0.0  ;;  %v640_v14 = vsel %vm557_vm4, %v2140_v41, 0.0  ;;  %v642_v16 = vsel %vm559_vm7, %v2140_v41, 0.0  ;;  %vm786_vm8 = vcmp.eq.s32.totalorder %v326_v2, %v2158_v49 }
  0xea   : > { %v1588_v17 = vpack.c.bf16 %v1155_v34, %v1153_v0  ;;  %v704_v18 = vadd.f32 %v640_v14, %v477_v35  ;;  %v706_v22 = vadd.f32 %v642_v16, %v479_v9  ;;  %v867_v23 = vsel %vm784_vm5, %v2169_v56, 0.0 }
  0xeb   : > { %v869_v24 = vsel %vm786_vm8, %v2169_v56, 0.0  ;;  %vm1011_vm9 = vcmp.eq.s32.totalorder %v325_v62, %v2179_v58  ;;  %vm1013_vm10 = vcmp.eq.s32.totalorder %v326_v2, %v2179_v58  ;;  %vm393_vm11 = vcmp.eq.s32.totalorder %v325_v62, %v2124_v30 }
  0xec   : > { %1589 = vmatpush1.bf16.msra.mxu0 %v1588_v17  ;;  %v931_v15 = vadd.f32 %v867_v23, %v704_v18  ;;  %v933_v19 = vadd.f32 %v869_v24, %v706_v22  ;;  %v1094_v25 = vsel %vm1011_vm9, %v2185_v3, 0.0  ;;  %v1096_v21 = vsel %vm1013_vm10, %v2185_v3, 0.0 }
  0xed   : > { %vm395_vm12 = vcmp.eq.s32.totalorder %v326_v2, %v2124_v30  ;;  %v476_v29 = vsel %vm393_vm11, %v2137_v40, 0.0  ;;  %vm556_vm13 = vcmp.eq.s32.totalorder %v325_v62, %v2148_v45  ;;  %vm558_vm14 = vcmp.eq.s32.totalorder %v326_v2, %v2148_v45 }
  0xee   : > { %v1158_v33 = vadd.f32 %v1094_v25, %v931_v15  ;;  %v1160_v32 = vadd.f32 %v1096_v21, %v933_v19  ;;  %v478_v36 = vsel %vm395_vm12, %v2137_v40, 0.0  ;;  %v639_v37 = vsel %vm556_vm13, %v2134_v39, 0.0 }
  0xef   : > { %v641_v12 = vsel %vm558_vm14, %v2134_v39, 0.0  ;;  %v703_v13 = vadd.f32 %v639_v37, %v476_v29  ;;  %vm783_vm15 = vcmp.eq.s32.totalorder %v325_v62, %v2155_v48  ;;  %vm785_vm0 = vcmp.eq.s32.totalorder %v326_v2, %v2155_v48 }
  0xf0   : > { %v1590_v38 = vpack.c.bf16 %v1160_v32, %v1158_v33  ;;  %v705_v42 = vadd.f32 %v641_v12, %v478_v36  ;;  %v866_v43 = vsel %vm783_vm15, %v2163_v52, 0.0  ;;  %v868_v47 = vsel %vm785_vm0, %v2163_v52, 0.0 }
  0xf1   : > { %v930_v50 = vadd.f32 %v866_v43, %v703_v13  ;;  %vm1010_vm1 = vcmp.eq.s32.totalorder %v325_v62, %v2172_v57  ;;  %vm1012_vm2 = vcmp.eq.s32.totalorder %v326_v2, %v2172_v57  ;;  %vm398_vm3 = vcmp.eq.s32.totalorder %v327_v51, %v2127_v31 }
  0xf2   : > { %1591 = vmatprep.subr.bf16.mxu0 %v1590_v38  ;;  %v932_v53 = vadd.f32 %v868_v47, %v705_v42  ;;  %v1093_v10 = vsel %vm1010_vm1, %v2182_v59, 0.0  ;;  %v1095_v11 = vsel %vm1012_vm2, %v2182_v59, 0.0  ;;  %vm561_vm4 = vcmp.eq.s32.totalorder %v327_v51, %v2151_v46 }
  0xf3   : > { %v1157_v27 = vadd.f32 %v1093_v10, %v930_v50  ;;  %vm788_vm5 = vcmp.eq.s32.totalorder %v327_v51, %v2158_v49  ;;  %vm400_vm6 = vcmp.eq.s32.totalorder %v328_v54, %v2127_v31  ;;  %v481_v7 = vsel %vm398_vm3, %v2145_v44, 0.0 }
  0xf4   : > { %v1159_v28 = vadd.f32 %v1095_v11, %v932_v53  ;;  %vm563_vm7 = vcmp.eq.s32.totalorder %v328_v54, %v2151_v46  ;;  %v483_v8 = vsel %vm400_vm6, %v2145_v44, 0.0  ;;  %v644_v4 = vsel %vm561_vm4, %v2140_v41, 0.0 }
  0xf5   : > { %v646_v55 = vsel %vm563_vm7, %v2140_v41, 0.0  ;;  %vm790_vm8 = vcmp.eq.s32.totalorder %v328_v54, %v2158_v49  ;;  %v708_v5 = vadd.f32 %v644_v4, %v481_v7  ;;  %v871_v61 = vsel %vm788_vm5, %v2169_v56, 0.0 }
  0xf6   : > { %v1592_v60 = vpack.c.bf16 %v1159_v28, %v1157_v27  ;;  %v710_v6 = vadd.f32 %v646_v55, %v483_v8  ;;  %v873_v62 = vsel %vm790_vm8, %v2169_v56, 0.0  ;;  %vm1015_vm9 = vcmp.eq.s32.totalorder %v327_v51, %v2179_v58 }
  0xf7   : > { %vm1017_vm10 = vcmp.eq.s32.totalorder %v328_v54, %v2179_v58  ;;  %vm397_vm11 = vcmp.eq.s32.totalorder %v327_v51, %v2124_v30  ;;  %v935_v20 = vadd.f32 %v871_v61, %v708_v5  ;;  %v1098_v63 = vsel %vm1015_vm9, %v2185_v3, 0.0 }
  0xf8   : > { %1593 = vmatpush1.bf16.msra.mxu0 %v1592_v60  ;;  %v937_v26 = vadd.f32 %v873_v62, %v710_v6  ;;  %v1100_v2 = vsel %vm1017_vm10, %v2185_v3, 0.0  ;;  %vm399_vm12 = vcmp.eq.s32.totalorder %v328_v54, %v2124_v30  ;;  %v480_v0 = vsel %vm397_vm11, %v2137_v40, 0.0 }
  0xf9   : > { %vm560_vm13 = vcmp.eq.s32.totalorder %v327_v51, %v2148_v45  ;;  %vm562_vm14 = vcmp.eq.s32.totalorder %v328_v54, %v2148_v45  ;;  %v1162_v34 = vadd.f32 %v1098_v63, %v935_v20  ;;  %v482_v9 = vsel %vm399_vm12, %v2137_v40, 0.0 }
  0xfa   : > { %v1164_v35 = vadd.f32 %v1100_v2, %v937_v26  ;;  %v643_v14 = vsel %vm560_vm13, %v2134_v39, 0.0  ;;  %v645_v16 = vsel %vm562_vm14, %v2134_v39, 0.0  ;;  %vm787_vm15 = vcmp.eq.s32.totalorder %v327_v51, %v2155_v48 }
  0xfb   : > { %v707_v17 = vadd.f32 %v643_v14, %v480_v0  ;;  %vm789_vm0 = vcmp.eq.s32.totalorder %v328_v54, %v2155_v48  ;;  %v709_v22 = vadd.f32 %v645_v16, %v482_v9  ;;  %v870_v23 = vsel %vm787_vm15, %v2163_v52, 0.0 }
  0xfc   : > { %v1594_v18 = vpack.c.bf16 %v1164_v35, %v1162_v34  ;;  %v872_v24 = vsel %vm789_vm0, %v2163_v52, 0.0  ;;  %vm1014_vm1 = vcmp.eq.s32.totalorder %v327_v51, %v2172_v57  ;;  %vm1016_vm2 = vcmp.eq.s32.totalorder %v328_v54, %v2172_v57 }
  0xfd   : > { %v934_v15 = vadd.f32 %v870_v23, %v707_v17  ;;  %v329_v19 = vadd.s32 192, %v2020_v1  ;;  %v936_v25 = vadd.f32 %v872_v24, %v709_v22  ;;  %v1097_v21 = vsel %vm1014_vm1, %v2182_v59, 0.0 }
  0xfe   : > { %1595 = vmatprep.subr.bf16.mxu0 %v1594_v18  ;;  %v1099_v29 = vsel %vm1016_vm2, %v2182_v59, 0.0  ;;  %v330_v33 = vadd.s32 200, %v2020_v1  ;;  %v331_v26 = vadd.s32 208, %v2020_v1  ;;  %v332_v34 = vadd.s32 216, %v2020_v1 }
  0xff   : > { %v1161_v32 = vadd.f32 %v1097_v21, %v934_v15  ;;  %vm402_vm3 = vcmp.eq.s32.totalorder %v329_v19, %v2127_v31  ;;  %vm565_vm4 = vcmp.eq.s32.totalorder %v329_v19, %v2151_v46  ;;  %vm792_vm5 = vcmp.eq.s32.totalorder %v329_v19, %v2158_v49 }
 0x100   : > { %v1163_v36 = vadd.f32 %v1099_v29, %v936_v25  ;;  %vm404_vm6 = vcmp.eq.s32.totalorder %v330_v33, %v2127_v31  ;;  %v485_v37 = vsel %vm402_vm3, %v2145_v44, 0.0  ;;  %vm567_vm7 = vcmp.eq.s32.totalorder %v330_v33, %v2151_v46 }
 0x101   : > { %v487_v12 = vsel %vm404_vm6, %v2145_v44, 0.0  ;;  %v648_v13 = vsel %vm565_vm4, %v2140_v41, 0.0  ;;  %v650_v38 = vsel %vm567_vm7, %v2140_v41, 0.0  ;;  %vm794_vm8 = vcmp.eq.s32.totalorder %v330_v33, %v2158_v49 }
 0x102   : > { %v1596_v42 = vpack.c.bf16 %v1163_v36, %v1161_v32  ;;  %v712_v43 = vadd.f32 %v648_v13, %v485_v37  ;;  %v714_v47 = vadd.f32 %v650_v38, %v487_v12  ;;  %v875_v50 = vsel %vm792_vm5, %v2169_v56, 0.0 }
 0x103   : > { %v877_v51 = vsel %vm794_vm8, %v2169_v56, 0.0  ;;  %vm1019_vm9 = vcmp.eq.s32.totalorder %v329_v19, %v2179_v58  ;;  %vm1021_vm10 = vcmp.eq.s32.totalorder %v330_v33, %v2179_v58  ;;  %vm401_vm11 = vcmp.eq.s32.totalorder %v329_v19, %v2124_v30 }
 0x104   : > { %1597 = vmatpush1.bf16.msra.mxu0 %v1596_v42  ;;  %v939_v53 = vadd.f32 %v875_v50, %v712_v43  ;;  %v941_v10 = vadd.f32 %v877_v51, %v714_v47  ;;  %v1102_v11 = vsel %vm1019_vm9, %v2185_v3, 0.0  ;;  %v1104_v54 = vsel %vm1021_vm10, %v2185_v3, 0.0 }
 0x105   : > { %vm403_vm12 = vcmp.eq.s32.totalorder %v330_v33, %v2124_v30  ;;  %v484_v27 = vsel %vm401_vm11, %v2137_v40, 0.0  ;;  %vm564_vm13 = vcmp.eq.s32.totalorder %v329_v19, %v2148_v45  ;;  %vm566_vm14 = vcmp.eq.s32.totalorder %v330_v33, %v2148_v45 }
 0x106   : > { %v1166_v28 = vadd.f32 %v1102_v11, %v939_v53  ;;  %v1168_v7 = vadd.f32 %v1104_v54, %v941_v10  ;;  %v486_v8 = vsel %vm403_vm12, %v2137_v40, 0.0  ;;  %v647_v4 = vsel %vm564_vm13, %v2134_v39, 0.0 }
 0x107   : > { %v649_v55 = vsel %vm566_vm14, %v2134_v39, 0.0  ;;  %v711_v60 = vadd.f32 %v647_v4, %v484_v27  ;;  %vm791_vm15 = vcmp.eq.s32.totalorder %v329_v19, %v2155_v48  ;;  %vm793_vm0 = vcmp.eq.s32.totalorder %v330_v33, %v2155_v48 }
 0x108   : > { %v1598_v5 = vpack.c.bf16 %v1168_v7, %v1166_v28  ;;  %v713_v6 = vadd.f32 %v649_v55, %v486_v8  ;;  %v874_v61 = vsel %vm791_vm15, %v2163_v52, 0.0  ;;  %v876_v62 = vsel %vm793_vm0, %v2163_v52, 0.0 }
 0x109   : > { %v938_v20 = vadd.f32 %v874_v61, %v711_v60  ;;  %vm1018_vm1 = vcmp.eq.s32.totalorder %v329_v19, %v2172_v57  ;;  %vm1020_vm2 = vcmp.eq.s32.totalorder %v330_v33, %v2172_v57  ;;  %vm406_vm3 = vcmp.eq.s32.totalorder %v331_v26, %v2127_v31 }
 0x10a   : > { %1599 = vmatprep.subr.bf16.mxu0 %v1598_v5  ;;  %v940_v63 = vadd.f32 %v876_v62, %v713_v6  ;;  %v1101_v2 = vsel %vm1018_vm1, %v2182_v59, 0.0  ;;  %v1103_v0 = vsel %vm1020_vm2, %v2182_v59, 0.0  ;;  %vm569_vm4 = vcmp.eq.s32.totalorder %v331_v26, %v2151_v46 }
 0x10b   : > { %v1165_v35 = vadd.f32 %v1101_v2, %v938_v20  ;;  %vm796_vm5 = vcmp.eq.s32.totalorder %v331_v26, %v2158_v49  ;;  %vm408_vm6 = vcmp.eq.s32.totalorder %v332_v34, %v2127_v31  ;;  %v489_v14 = vsel %vm406_vm3, %v2145_v44, 0.0 }
 0x10c   : > { %v1167_v9 = vadd.f32 %v1103_v0, %v940_v63  ;;  %vm571_vm7 = vcmp.eq.s32.totalorder %v332_v34, %v2151_v46  ;;  %v491_v16 = vsel %vm408_vm6, %v2145_v44, 0.0  ;;  %v652_v17 = vsel %vm569_vm4, %v2140_v41, 0.0 }
 0x10d   : > { %v654_v18 = vsel %vm571_vm7, %v2140_v41, 0.0  ;;  %vm798_vm8 = vcmp.eq.s32.totalorder %v332_v34, %v2158_v49  ;;  %v716_v23 = vadd.f32 %v652_v17, %v489_v14  ;;  %v879_v15 = vsel %vm796_vm5, %v2169_v56, 0.0 }
 0x10e   : > { %v1600_v22 = vpack.c.bf16 %v1167_v9, %v1165_v35  ;;  %v718_v24 = vadd.f32 %v654_v18, %v491_v16  ;;  %v881_v19 = vsel %vm798_vm8, %v2169_v56, 0.0  ;;  %vm1023_vm9 = vcmp.eq.s32.totalorder %v331_v26, %v2179_v58 }
 0x10f   : > { %vm1025_vm10 = vcmp.eq.s32.totalorder %v332_v34, %v2179_v58  ;;  %vm405_vm11 = vcmp.eq.s32.totalorder %v331_v26, %v2124_v30  ;;  %v943_v25 = vadd.f32 %v879_v15, %v716_v23  ;;  %v1106_v29 = vsel %vm1023_vm9, %v2185_v3, 0.0 }
 0x110   : > { %1601 = vmatpush1.bf16.msra.mxu0 %v1600_v22  ;;  %v945_v21 = vadd.f32 %v881_v19, %v718_v24  ;;  %v1108_v33 = vsel %vm1025_vm10, %v2185_v3, 0.0  ;;  %vm407_vm12 = vcmp.eq.s32.totalorder %v332_v34, %v2124_v30  ;;  %v488_v32 = vsel %vm405_vm11, %v2137_v40, 0.0 }
 0x111   : > { %vm568_vm13 = vcmp.eq.s32.totalorder %v331_v26, %v2148_v45  ;;  %vm570_vm14 = vcmp.eq.s32.totalorder %v332_v34, %v2148_v45  ;;  %v1170_v36 = vadd.f32 %v1106_v29, %v943_v25  ;;  %v490_v12 = vsel %vm407_vm12, %v2137_v40, 0.0 }
 0x112   : > { %v1172_v37 = vadd.f32 %v1108_v33, %v945_v21  ;;  %v651_v13 = vsel %vm568_vm13, %v2134_v39, 0.0  ;;  %v653_v38 = vsel %vm570_vm14, %v2134_v39, 0.0  ;;  %vm795_vm15 = vcmp.eq.s32.totalorder %v331_v26, %v2155_v48 }
 0x113   : > { %v715_v42 = vadd.f32 %v651_v13, %v488_v32  ;;  %vm797_vm0 = vcmp.eq.s32.totalorder %v332_v34, %v2155_v48  ;;  %v717_v47 = vadd.f32 %v653_v38, %v490_v12  ;;  %v878_v50 = vsel %vm795_vm15, %v2163_v52, 0.0 }
 0x114   : > { %v1602_v43 = vpack.c.bf16 %v1172_v37, %v1170_v36  ;;  %v880_v51 = vsel %vm797_vm0, %v2163_v52, 0.0  ;;  %vm1022_vm1 = vcmp.eq.s32.totalorder %v331_v26, %v2172_v57  ;;  %vm1024_vm2 = vcmp.eq.s32.totalorder %v332_v34, %v2172_v57 }
 0x115   : > { %v942_v53 = vadd.f32 %v878_v50, %v715_v42  ;;  %v333_v10 = vadd.s32 224, %v2020_v1  ;;  %v944_v11 = vadd.f32 %v880_v51, %v717_v47  ;;  %v1105_v54 = vsel %vm1022_vm1, %v2182_v59, 0.0 }
 0x116   : > { %1603 = vmatprep.subr.bf16.mxu0 %v1602_v43  ;;  %v1107_v27 = vsel %vm1024_vm2, %v2182_v59, 0.0  ;;  %v334_v28 = vadd.s32 232, %v2020_v1  ;;  %v335_v21 = vadd.s32 240, %v2020_v1  ;;  %v336_v36 = vadd.s32 248, %v2020_v1 }
 0x117   : > { %v1169_v7 = vadd.f32 %v1105_v54, %v942_v53  ;;  %vm410_vm3 = vcmp.eq.s32.totalorder %v333_v10, %v2127_v31  ;;  %vm573_vm4 = vcmp.eq.s32.totalorder %v333_v10, %v2151_v46  ;;  %vm800_vm5 = vcmp.eq.s32.totalorder %v333_v10, %v2158_v49  ;;  %v1245_v54 = vld [vmem:[%s2008_s6] sm:$0xff] }
 0x118   : > { %v1171_v8 = vadd.f32 %v1107_v27, %v944_v11  ;;  %vm412_vm6 = vcmp.eq.s32.totalorder %v334_v28, %v2127_v31  ;;  %v493_v4 = vsel %vm410_vm3, %v2145_v44, 0.0  ;;  %vm575_vm7 = vcmp.eq.s32.totalorder %v334_v28, %v2151_v46 }
 0x119   : > { %v495_v55 = vsel %vm412_vm6, %v2145_v44, 0.0  ;;  %v656_v60 = vsel %vm573_vm4, %v2140_v41, 0.0  ;;  %v658_v5 = vsel %vm575_vm7, %v2140_v41, 0.0  ;;  %vm802_vm8 = vcmp.eq.s32.totalorder %v334_v28, %v2158_v49 }
 0x11a   : > { %v1604_v6 = vpack.c.bf16 %v1171_v8, %v1169_v7  ;;  %v720_v61 = vadd.f32 %v656_v60, %v493_v4  ;;  %v722_v62 = vadd.f32 %v658_v5, %v495_v55  ;;  %v883_v20 = vsel %vm800_vm5, %v2169_v56, 0.0 }
 0x11b   : > { %v885_v26 = vsel %vm802_vm8, %v2169_v56, 0.0  ;;  %vm1027_vm9 = vcmp.eq.s32.totalorder %v333_v10, %v2179_v58  ;;  %vm1029_vm10 = vcmp.eq.s32.totalorder %v334_v28, %v2179_v58  ;;  %vm409_vm11 = vcmp.eq.s32.totalorder %v333_v10, %v2124_v30 }
 0x11c   : > { %1605 = vmatpush1.bf16.msra.mxu0 %v1604_v6  ;;  %v947_v63 = vadd.f32 %v883_v20, %v720_v61  ;;  %v949_v2 = vadd.f32 %v885_v26, %v722_v62  ;;  %v1110_v0 = vsel %vm1027_vm9, %v2185_v3, 0.0  ;;  %v1112_v34 = vsel %vm1029_vm10, %v2185_v3, 0.0 }
 0x11d   : > { %vm411_vm12 = vcmp.eq.s32.totalorder %v334_v28, %v2124_v30  ;;  %v492_v35 = vsel %vm409_vm11, %v2137_v40, 0.0  ;;  %vm572_vm13 = vcmp.eq.s32.totalorder %v333_v10, %v2148_v45  ;;  %vm574_vm14 = vcmp.eq.s32.totalorder %v334_v28, %v2148_v45 }
 0x11e   : > { %v1174_v9 = vadd.f32 %v1110_v0, %v947_v63  ;;  %v1176_v14 = vadd.f32 %v1112_v34, %v949_v2  ;;  %v494_v16 = vsel %vm411_vm12, %v2137_v40, 0.0  ;;  %v655_v17 = vsel %vm572_vm13, %v2134_v39, 0.0 }
 0x11f   : > { %v657_v18 = vsel %vm574_vm14, %v2134_v39, 0.0  ;;  %v719_v22 = vadd.f32 %v655_v17, %v492_v35  ;;  %vm799_vm15 = vcmp.eq.s32.totalorder %v333_v10, %v2155_v48  ;;  %vm801_vm0 = vcmp.eq.s32.totalorder %v334_v28, %v2155_v48 }
 0x120   : > { %v1606_v23 = vpack.c.bf16 %v1176_v14, %v1174_v9  ;;  %v721_v24 = vadd.f32 %v657_v18, %v494_v16  ;;  %v882_v15 = vsel %vm799_vm15, %v2163_v52, 0.0  ;;  %v884_v19 = vsel %vm801_vm0, %v2163_v52, 0.0 }
 0x121   : > { %v946_v25 = vadd.f32 %v882_v15, %v719_v22  ;;  %vm1026_vm1 = vcmp.eq.s32.totalorder %v333_v10, %v2172_v57  ;;  %vm1028_vm2 = vcmp.eq.s32.totalorder %v334_v28, %v2172_v57  ;;  %vm414_vm3 = vcmp.eq.s32.totalorder %v335_v21, %v2127_v31 }
 0x122   : > { %1607 = vmatprep.subr.bf16.mxu0 %v1606_v23  ;;  %v948_v29 = vadd.f32 %v884_v19, %v721_v24  ;;  %v1109_v33 = vsel %vm1026_vm1, %v2182_v59, 0.0  ;;  %v1111_v32 = vsel %vm1028_vm2, %v2182_v59, 0.0  ;;  %vm577_vm4 = vcmp.eq.s32.totalorder %v335_v21, %v2151_v46 }
 0x123   : > { %v1173_v37 = vadd.f32 %v1109_v33, %v946_v25  ;;  %vm804_vm5 = vcmp.eq.s32.totalorder %v335_v21, %v2158_v49  ;;  %vm416_vm6 = vcmp.eq.s32.totalorder %v336_v36, %v2127_v31  ;;  %v497_v13 = vsel %vm414_vm3, %v2145_v44, 0.0 }
 0x124   : > { %v1175_v12 = vadd.f32 %v1111_v32, %v948_v29  ;;  %vm579_vm7 = vcmp.eq.s32.totalorder %v336_v36, %v2151_v46  ;;  %v499_v38 = vsel %vm416_vm6, %v2145_v44, 0.0  ;;  %v660_v42 = vsel %vm577_vm4, %v2140_v41, 0.0 }
 0x125   : > { %v662_v1 = vsel %vm579_vm7, %v2140_v41, 0.0  ;;  %vm806_vm8 = vcmp.eq.s32.totalorder %v336_v36, %v2158_v49  ;;  %v724_v47 = vadd.f32 %v660_v42, %v497_v13  ;;  %v887_v51 = vsel %vm804_vm5, %v2169_v56, 0.0 }
 0x126   : > { %v1608_v43 = vpack.c.bf16 %v1175_v12, %v1173_v37  ;;  %v726_v50 = vadd.f32 %v662_v1, %v499_v38  ;;  %v889_v53 = vsel %vm806_vm8, %v2169_v56, 0.0  ;;  %vm1031_vm9 = vcmp.eq.s32.totalorder %v335_v21, %v2179_v58 }
 0x127   : > { %vm1033_vm10 = vcmp.eq.s32.totalorder %v336_v36, %v2179_v58  ;;  %vm413_vm11 = vcmp.eq.s32.totalorder %v335_v21, %v2124_v30  ;;  %v951_v31 = vadd.f32 %v887_v51, %v724_v47  ;;  %v1114_v41 = vsel %vm1031_vm9, %v2185_v3, 0.0 }
 0x128   : > { %1609 = vmatpush1.bf16.msra.mxu0 %v1608_v43  ;;  %v953_v44 = vadd.f32 %v889_v53, %v726_v50  ;;  %v1116_v46 = vsel %vm1033_vm10, %v2185_v3, 0.0  ;;  %vm415_vm12 = vcmp.eq.s32.totalorder %v336_v36, %v2124_v30  ;;  %v496_v49 = vsel %vm413_vm11, %v2137_v40, 0.0 }
 0x129   : > { %vm576_vm13 = vcmp.eq.s32.totalorder %v335_v21, %v2148_v45  ;;  %vm578_vm14 = vcmp.eq.s32.totalorder %v336_v36, %v2148_v45  ;;  %v1178_v56 = vadd.f32 %v1114_v41, %v951_v31  ;;  %v498_v58 = vsel %vm415_vm12, %v2137_v40, 0.0 }
 0x12a   : > { %v1180_v10 = vadd.f32 %v1116_v46, %v953_v44  ;;  %v659_v11 = vsel %vm576_vm13, %v2134_v39, 0.0  ;;  %v661_v27 = vsel %vm578_vm14, %v2134_v39, 0.0  ;;  %vm803_vm15 = vcmp.eq.s32.totalorder %v335_v21, %v2155_v48 }
 0x12b   : > { %v723_v28 = vadd.f32 %v659_v11, %v496_v49  ;;  %vm805_vm0 = vcmp.eq.s32.totalorder %v336_v36, %v2155_v48  ;;  %v725_v3 = vadd.f32 %v661_v27, %v498_v58  ;;  %v886_v7 = vsel %vm803_vm15, %v2163_v52, 0.0 }
 0x12c   : > { %v1610_v30 = vpack.c.bf16 %v1180_v10, %v1178_v56  ;;  %v888_v45 = vsel %vm805_vm0, %v2163_v52, 0.0  ;;  %vm1030_vm1 = vcmp.eq.s32.totalorder %v335_v21, %v2172_v57  ;;  %vm1032_vm2 = vcmp.eq.s32.totalorder %v336_v36, %v2172_v57 }
 0x12d   : > { %v950_v8 = vadd.f32 %v886_v7, %v723_v28  ;;  %v1311_v40 = vcombine.high %v1245_v54, %v1245_v54  ;;  %v952_v39 = vadd.f32 %v888_v45, %v725_v3  ;;  %v1113_v4 = vsel %vm1030_vm1, %v2182_v59, 0.0 }
 0x12e   : > { %1611 = vmatprep.subr.bf16.mxu0 %v1610_v30  ;;  %v1115_v48 = vsel %vm1032_vm2, %v2182_v59, 0.0 }
 0x12f   : > { %v1177_v55 = vadd.f32 %v1113_v4, %v950_v8  ;;  %1377 = vmatprep.mubr.f32.mxu0 %v1311_v40  ;;  %v1179_v60 = vadd.f32 %v1115_v48, %v952_v39 }
 0x131   : > { %v1612_v5 = vpack.c.bf16 %v1179_v60, %v1177_v55 }
 0x133   : > { %1613 = vmatpush1.bf16.msra.mxu0 %v1612_v5 }
 0x136   : > { %1378 = vmatmul.mubr.f32.vlgmr.msra.gmra.mrb[0].mxu0 %v1245_v54 }
 0x209   : > { %v1379_v52 = vpop.f32.mrb[0].mxu0 }
 0x20a   : > { %v1381_v57 = vpop.f32.mrb[1].mxu0 }
 0x20b   : > { %v1386_v6 = vcombine.low %v1379_v52, %v1381_v57 }
 0x20d   : > { %1388 = vst [vmem:[%s228_s19] sm:$0xff] %v1386_v6 }
 0x20e   : > { %1759 = shalt.err (!%p1756_p2)
}
 0x20f   : > { %s1760_s8 = scalar_lea.hbm %s2874_s27, 128  ;;  %s1764_s4 = scalar_lea.hbm %s2925_s2, 256 }
 0x210   : > { %p1761_p9 = scmp.ne.s32.totalorder %s2874_s27, %s1760_s8  ;;  %p1765_p6 = scmp.lt.u32.totalorder %s2874_s27, %s2925_s2 }
 0x211   : > { %p1766_p13 = scmp.lt.u32.totalorder %s1764_s4, %s1760_s8  ;;  %p1768_p0 = scmp.lt.u32.totalorder %s1760_s8, %s2874_s27 }
 0x212   : > { %p1762_p11 = pnand %p1761_p9, %p2946_p5 }
 0x213   : > { %p1767_p8 = por %p1766_p13, %p1765_p6 }
 0x214   : > { %p1763_p3 = pneg %p1762_p11 }
 0x215   : > { %p1769_p7 = por %p1768_p0, %p1767_p8 }
 0x217   : > { %p1770_p4 = pnand %p1769_p7, %p1763_p3 }
 0x219   : > { %1773 = shalt.err (!%p1770_p4)
}
 0x21a   : > { %1620 = dma.vmem_to_hbm [thread:$0]  (%p2946_p5), %s2876_s30, 128, %s2874_s27, %s1390_s28  }
 0x21b PF: > { %s1420_s29 = sand.u32 1, %s1812_s9   ;;  %p2947_p10 = scmp.ne.s32.totalorder %s2931_s24, 0 }
 0x21c   : > { %p2948_p12 = scmp.ge.s32.totalorder %s1832_s14, 2  ;;  %s1421_s16 = scalar_lea.sflag [#allocation5], %s1420_s29 }
 0x21e   : > { %p1630_p1 = pnand %p2948_p12, %p2947_p10 }
 0x220   : > { %1807 = dma.done.wait (!%p1630_p1), %s1421_s16, 128  }
 0x221   : > { %1809 = vsyncadd (!%p1630_p1), %s1421_s16, 4294967168  ;;  %s21_s14 = sadd.s32 1, %s1832_s14   ;;  %s2949_s9 = smov %s1816_s10 }
 0x222   : > { %p18_p2 = scmp.ge.s32.totalorder %s21_s14, 4   ;;  %s2950_s10 = smov %s1820_s11 }
 0x223   : > { %s2951_s11 = smov %s1910_s23  ;;  %s2952_s12 = smov %s1828_s13 }
 0x224   : > { %s2953_s13 = smov %s2955_s17  ;;  %20 = sbr.rel (!%p18_p2) target bundleno = 8 (0x8), region = 90 }
 0x22b   :  { %1426 = vsyncpa [#allocation4], 1 }
 0x22c   :  { %1428 = vsyncpa [#allocation4 + $0x1], 1 }
 0x22d   :  { %1429 = vsyncpa [#allocation7], 1 }
 0x22e   :  { %1431 = vsyncpa [#allocation7 + $0x1], 1 }
 0x22f   :  { %1432 = vsyncpa [#allocation5], 1 }
 0x230   :  { %1434 = vsyncpa [#allocation5 + $0x1], 1 }

</bundles_post_ra>
